<compile_context>
chip_gen: v7x
topology: tpu7x:2x2x1
jax: 0.10.0
libtpu: 0.0.40
codegen_flags: <defaults>
</compile_context>

<pallas_src>
import math
import numpy as np

import jax
import jax.numpy as jnp
from jax import lax
from jax.experimental import pallas as pl
from jax.experimental.pallas import tpu as pltpu

HALF_PI = math.pi / 2.0


def _round_up(x, m):
    return (x + m - 1) // m * m


# ---------------------------------------------------------------------------
# Pallas kernel + wrapper: whole loss (matmul + elementwise + reduction)
# ---------------------------------------------------------------------------
def loss_pallas(H, tmp, res, res_p, syn, tb=None, binary_syn=True):
    """H: (a,b); tmp: (a,1); res: (a,B); res_p, syn: (b,B). Returns scalar.

    binary_syn=True assumes syn is exactly {0,1} (syndrome bits) and fuses the
    two logs into one -- identical values wherever the two-log form is finite,
    and no 0*(-inf) NaN.  binary_syn=False keeps the original two-log formula.
    """
    f32 = jnp.float32
    a, B = res.shape
    b = res_p.shape[0]
    assert H.shape == (a, b) and tmp.shape == (a, 1)
    assert res_p.shape == (b, B) and syn.shape == (b, B)

    HT = H.astype(f32).T            # (b, a), tiny, VMEM resident in-kernel
    tmp = tmp.astype(f32)
    res = res.astype(f32)
    res_p = res_p.astype(f32)
    # syn keeps the caller dtype (int8/bool cuts its HBM traffic by 4x); the
    # cast to f32 happens in-kernel.
    # TODO(synk): optionally stream res/res_p as bf16 and upcast in-kernel --
    # halves the remaining HBM bytes but slightly changes numerics vs f32.

    # Batch tile on the lane axis: multiple of 128, capped at 1024.  Per-step
    # double-buffered VMEM is ~2*tb*(a+3b)*4B ~= 1 MiB at tb=1024, far under
    # every generation's scoped limit; bigger tiles mainly amortize the
    # ~0.35 us per-grid-step overhead.
    if tb is None:
        tb = 128 if B <= 128 else min(1024, _round_up((B + 1) // 2, 128))
    tb = max(128, _round_up(tb, 128))

    num_blocks = -(-B // tb)
    n_split = 2 if num_blocks >= 2 else 1      # use both TensorCores on v7x
    num_blocks = _round_up(num_blocks, n_split)
    n_steps = num_blocks // n_split
    Bp = num_blocks * tb
    pad = Bp - B

    if pad:
        # Default path: padded columns contribute exactly 0 -> no masking.
        # Parity path pads res_p with 0.5 (finite logs) and masks in-kernel.
        res = jnp.concatenate([res, jnp.broadcast_to(-tmp, (a, pad))], axis=1)
        res_p = jnp.pad(res_p, ((0, 0), (0, pad)),
                        constant_values=(0.0 if binary_syn else 0.5))
        syn = jnp.pad(syn, ((0, 0), (0, pad)))

    def kernel(ht_ref, tmp_ref, res_ref, resp_ref, syn_ref, out_ref):
        r = pl.program_id(1)

        @pl.when(r == 0)
        def _():
            out_ref[...] = jnp.zeros_like(out_ref)

        # loss_a tile = H^T @ (tmp + res)  -> (b, tb), batch on the lane axis.
        x = res_ref[...] + tmp_ref[...]                               # (a, tb)
        loss_a = jnp.dot(ht_ref[...], x,
                         preferred_element_type=jnp.float32)          # (b, tb)
        term_a = jnp.abs(jnp.sin(loss_a * HALF_PI))

        rp = jnp.abs(jnp.sin(resp_ref[...] * HALF_PI))                # (b, tb)
        syn_f = syn_ref[...].astype(jnp.float32)
        if binary_syn:
            # syn in {0,1}: identical to the two-log form wherever it is
            # finite; avoids 0*(-inf)=NaN when rp hits exactly 0 or 1.
            loss_b = -jnp.log(jnp.where(syn_f > 0.5, rp, 1.0 - rp))
        else:
            loss_b = -(1.0 - syn_f) * jnp.log(1.0 - rp) - syn_f * jnp.log(rp)

        contrib = term_a + loss_b
        if (not binary_syn) and pad:
            # Only the parity path needs the padded-column mask.
            blk = pl.program_id(0) * n_steps + r
            col = blk * tb + lax.broadcasted_iota(jnp.int32, (b, tb), 1)
            contrib = jnp.where(col < B, contrib, 0.0)

        out_ref[...] += contrib[None]                                 # (1,b,tb)

    batch_blk = lambda s, r: (0, s * n_steps + r)
    # TODO(synk): for large codes (a, b in the hundreds) mark the H^T / tmp
    # specs with pipeline_mode=pl.Buffered(1); at (30, 32) their footprint is
    # ~4 KiB so default double-buffering is irrelevant.
    partial = pl.pallas_call(
        kernel,
        out_shape=jax.ShapeDtypeStruct((n_split, b, tb), jnp.float32),
        grid=(n_split, n_steps),
        in_specs=[
            pl.BlockSpec((b, a), lambda s, r: (0, 0)),    # H^T, VMEM resident
            pl.BlockSpec((a, 1), lambda s, r: (0, 0)),    # tmp, VMEM resident
            pl.BlockSpec((a, tb), batch_blk),             # res   batch tile
            pl.BlockSpec((b, tb), batch_blk),             # res_p batch tile
            pl.BlockSpec((b, tb), batch_blk),             # syn   batch tile
        ],
        out_specs=pl.BlockSpec((1, b, tb), lambda s, r: (s, 0, 0)),
        compiler_params=pltpu.CompilerParams(
            dimension_semantics=("parallel", "arbitrary"),
            vmem_limit_bytes=32 * 1024 * 1024,
        ),
    )(HT, tmp, res, res_p, syn)

    # Tiny (n_split, b, tb) partial tensor; the final cross-lane reduce happens
    # once here instead of per grid step on the TPU XLU.
    return jnp.sum(partial)


# ---------------------------------------------------------------------------
# Wrapper reproducing LossFunc.forward slicing/cat semantics with single
# reshape / transpose / gather ops (no per-chunk slice+concat loops).
# ---------------------------------------------------------------------------
def loss_func_forward(H, preds0, preds1, data_x, data_y, a, b,
                      tb=None, binary_syn=True):
    """preds*/data_* are (N, 1) column vectors, as in the PyTorch forward()."""
    ab = a + b
    By = data_y.shape[0] // a       # graphs in datas.y (a rows each)
    Bx = data_x.shape[0] // ab      # graphs in datas.x (a+b rows each)
    assert Bx == By, "datas.x and datas.y describe different batch sizes"

    p0 = preds0.reshape(-1).astype(jnp.float32)
    p1 = preds1.reshape(-1).astype(jnp.float32)
    y0 = data_y.reshape(-1).astype(jnp.float32)
    x0 = data_x.reshape(-1)         # syn keeps caller dtype (int8/bool is fine)

    # tmp   = datas.y[0:a]                                   -> (a, 1)
    tmp = y0[0:a].reshape(a, 1)
    # res   = cat_j preds[0][j*a : (j+1)*a]                  -> (a, B)
    res = p0[: By * a].reshape(By, a).T
    # res_p = cat_j preds[1][(j+1)*a : (j+1)*a + b]          -> (b, B)
    idx = a * jnp.arange(1, By + 1)[None, :] + jnp.arange(b)[:, None]
    res_p = p1[idx]                                          # one gather
    # syn   = cat_j datas.x[j*(a+b)+a : j*(a+b)+a+b]         -> (b, B)
    syn = x0[: Bx * ab].reshape(Bx, ab)[:, a:].T

    return loss_pallas(H, tmp, res, res_p, syn, tb=tb, binary_syn=binary_syn)


# ---------------------------------------------------------------------------
# Pure-NumPy float64 reference that mirrors the original chunk-loop forward().
# ---------------------------------------------------------------------------
def loss_func_reference(H, preds0, preds1, data_x, data_y, a, b):
    Hn = np.asarray(H, dtype=np.float64)
    p0 = np.asarray(preds0, dtype=np.float64)
    p1 = np.asarray(preds1, dtype=np.float64)
    xn = np.asarray(data_x, dtype=np.float64)
    yn = np.asarray(data_y, dtype=np.float64)

    tmp = yn[0:a]
    res = p0[0:a]
    res_p = p1[a:a + b]
    syn = xn[a:a + b]
    for i in range(a, yn.shape[0], a):
        res = np.concatenate([res, p0[i:i + a]], axis=1)
        res_p = np.concatenate([res_p, p1[i + a:i + a + b]], axis=1)
    for i in range(a + b, xn.shape[0], a + b):
        syn = np.concatenate([syn, xn[i + a:i + a + b]], axis=1)

    loss_a = Hn.T @ (tmp + res)
    rp = np.abs(np.sin(res_p * (np.pi / 2.0)))
    loss_b = -(1.0 - syn) * np.log(1.0 - rp) - syn * np.log(rp)
    return float(np.abs(np.sin(loss_a * (np.pi / 2.0))).sum() + loss_b.sum())


if __name__ == "__main__":
    # Small, shape-consistent instance: surface-code-like sizes with L=4.
    L = 4
    a = 2 * L * L          # 32 = max(H.size())
    b = 2 * L * L - 2      # 30 = min(H.size())

    key = jax.random.PRNGKey(0)
    k_h = jax.random.fold_in(key, 0)

    # Deterministic synthetic parity-check matrix: PCM is (b, a); the module
    # uses H = PCM.t() of shape (a, b).  (H_prep is stored but unused.)
    pcm = jax.random.bernoulli(k_h, 0.25, (b, a)).astype(jnp.float32)
    H = pcm.T

    def make_inputs(B):
        kp0, kp1, kx, ky = jax.random.split(jax.random.fold_in(key, B), 4)
        preds0 = jax.random.uniform(kp0, (a * B, 1), jnp.float32, -1.0, 1.0)
        preds1 = jax.random.uniform(kp1, ((a + b) * B, 1), jnp.float32, 0.1, 0.9)
        data_x = jax.random.bernoulli(kx, 0.5, ((a + b) * B, 1)).astype(jnp.float32)
        data_y = jax.random.bernoulli(ky, 0.5, (a * B, 1)).astype(jnp.float32)
        return preds0, preds1, data_x, data_y

    # Case 1: tiny batch (B=2), single tile; exercise both kernel paths.
    p0, p1, dx, dy = make_inputs(2)
    ref = loss_func_reference(H, p0, p1, dx, dy, a, b)
    got = jax.block_until_ready(loss_func_forward(H, p0, p1, dx, dy, a, b))
    assert jnp.allclose(got, ref, rtol=1e-3, atol=1e-3), (got, ref)
    got_parity = jax.block_until_ready(
        loss_func_forward(H, p0, p1, dx, dy, a, b, binary_syn=False))
    assert jnp.allclose(got_parity, ref, rtol=1e-3, atol=1e-3), (got_parity, ref)

    # Case 2: larger batch with a small forced tile -> 2-D grid (megacore
    # split x reduction steps), resident accumulator and padded batch columns.
    B2 = 500
    p0, p1, dx, dy = make_inputs(B2)
    ref2 = loss_func_reference(H, p0, p1, dx, dy, a, b)
    got2 = jax.block_until_ready(
        loss_func_forward(H, p0, p1, dx, dy, a, b, tb=128))
    assert jnp.allclose(got2, ref2, rtol=1e-3, atol=1e-3), (got2, ref2)

    print("KERNEL_OK")
</pallas_src>

<mosaic_0001>
module attributes {stable_mosaic.version = 11 : i64} {
  func.func @kernel(%arg0: i32, %arg1: i32, %arg2: memref<30x32xf32, #tpu.memory_space<vmem>>, %arg3: memref<32x1xf32, #tpu.memory_space<vmem>>, %arg4: memref<32x128xf32, #tpu.memory_space<vmem>>, %arg5: memref<30x128xf32, #tpu.memory_space<vmem>>, %arg6: memref<30x128xf32, #tpu.memory_space<vmem>>, %arg7: memref<1x30x128xf32, #tpu.memory_space<vmem>>) attributes {dimension_semantics = [#tpu.dimension_semantics<parallel>, #tpu.dimension_semantics<arbitrary>], iteration_bounds = array<i64: 1, 1>, scalar_prefetch = 0 : i64, scratch_operands = 0 : i64, tpu.core_type = #tpu.core_type<tc>, window_params = [{pipeline_mode = #tpu.pipeline_mode<synchronous>, transform_indices = @transform_0, window_bounds = array<i64: 30, 32>}, {pipeline_mode = #tpu.pipeline_mode<synchronous>, transform_indices = @transform_1, window_bounds = array<i64: 32, 1>}, {transform_indices = @transform_2, window_bounds = array<i64: 32, 128>}, {transform_indices = @transform_3, window_bounds = array<i64: 30, 128>}, {transform_indices = @transform_4, window_bounds = array<i64: 30, 128>}, {transform_indices = @transform_5, window_bounds = array<i64: 1, 30, 128>}]} {
    %c0_i32 = arith.constant 0 : i32
    %0 = arith.cmpi eq, %arg1, %c0_i32 : i32
    %1 = arith.extui %0 : i1 to i32
    %c0_i32_0 = arith.constant 0 : i32
    %2 = arith.cmpi ne, %1, %c0_i32_0 : i32
    scf.if %2 {
      %cst_21 = arith.constant 0.000000e+00 : f32
      %32 = vector.broadcast %cst_21 : f32 to vector<1x30x128xf32>
      %c0_22 = arith.constant 0 : index
      %c0_23 = arith.constant 0 : index
      %c0_24 = arith.constant 0 : index
      %33 = vector.load %arg7[%c0_22, %c0_23, %c0_24] : memref<1x30x128xf32, #tpu.memory_space<vmem>>, vector<1x30x128xf32>
      tpu.vector_store %arg7[%c0_22, %c0_23, %c0_24], %32 {strides = array<i32>} : memref<1x30x128xf32, #tpu.memory_space<vmem>>, vector<1x30x128xf32>,
    } else {
    }
    %c0 = arith.constant 0 : index
    %c0_1 = arith.constant 0 : index
    %3 = vector.load %arg4[%c0, %c0_1] : memref<32x128xf32, #tpu.memory_space<vmem>>, vector<32x128xf32>
    %c0_2 = arith.constant 0 : index
    %c0_3 = arith.constant 0 : index
    %4 = vector.load %arg3[%c0_2, %c0_3] : memref<32x1xf32, #tpu.memory_space<vmem>>, vector<32x1xf32>
    %5 = vector.broadcast %4 : vector<32x1xf32> to vector<32x128xf32>
    %6 = arith.addf %3, %5 : vector<32x128xf32>
    %c0_4 = arith.constant 0 : index
    %c0_5 = arith.constant 0 : index
    %7 = vector.load %arg2[%c0_4, %c0_5] : memref<30x32xf32, #tpu.memory_space<vmem>>, vector<30x32xf32>
    %cst = arith.constant dense<0.000000e+00> : vector<30x128xf32>
    %8 = tpu.matmul %7, %6, %cst {dimension_numbers = #tpu.dot_dimension_numbers<[1], [0], [0], [1], [0, 0, 1, 1], [], []>} : vector<30x32xf32>, vector<32x128xf32>, vector<30x128xf32> -> vector<30x128xf32>
    %cst_6 = arith.constant 1.57079637 : f32
    %9 = vector.broadcast %cst_6 : f32 to vector<30x128xf32>
    %10 = arith.mulf %8, %9 : vector<30x128xf32>
    %11 = math.sin %10 : vector<30x128xf32>
    %12 = math.absf %11 : vector<30x128xf32>
    %c0_7 = arith.constant 0 : index
    %c0_8 = arith.constant 0 : index
    %13 = vector.load %arg5[%c0_7, %c0_8] : memref<30x128xf32, #tpu.memory_space<vmem>>, vector<30x128xf32>
    %cst_9 = arith.constant 1.57079637 : f32
    %14 = vector.broadcast %cst_9 : f32 to vector<30x128xf32>
    %15 = arith.mulf %13, %14 : vector<30x128xf32>
    %16 = math.sin %15 : vector<30x128xf32>
    %17 = math.absf %16 : vector<30x128xf32>
    %c0_10 = arith.constant 0 : index
    %c0_11 = arith.constant 0 : index
    %18 = vector.load %arg6[%c0_10, %c0_11] : memref<30x128xf32, #tpu.memory_space<vmem>>, vector<30x128xf32>
    %cst_12 = arith.constant 5.000000e-01 : f32
    %19 = vector.broadcast %cst_12 : f32 to vector<30x128xf32>
    %20 = arith.cmpf ogt, %18, %19 : vector<30x128xf32>
    %cst_13 = arith.constant 1.000000e+00 : f32
    %21 = vector.broadcast %cst_13 : f32 to vector<30x128xf32>
    %22 = arith.subf %21, %17 : vector<30x128xf32>
    %23 = arith.select %20, %17, %22 : vector<30x128xi1>, vector<30x128xf32>
    %24 = math.log %23 : vector<30x128xf32>
    %cst_14 = arith.constant 0.000000e+00 : f32
    %25 = vector.broadcast %cst_14 : f32 to vector<30x128xf32>
    %26 = arith.subf %25, %24 : vector<30x128xf32>
    %27 = arith.addf %12, %26 : vector<30x128xf32>
    %c0_15 = arith.constant 0 : index
    %c0_16 = arith.constant 0 : index
    %c0_17 = arith.constant 0 : index
    %28 = vector.load %arg7[%c0_15, %c0_16, %c0_17] : memref<1x30x128xf32, #tpu.memory_space<vmem>>, vector<1x30x128xf32>
    %29 = vector.shape_cast %27 : vector<30x128xf32> to vector<1x30x128xf32>
    %30 = arith.addf %28, %29 : vector<1x30x128xf32>
    %c0_18 = arith.constant 0 : index
    %c0_19 = arith.constant 0 : index
    %c0_20 = arith.constant 0 : index
    %31 = vector.load %arg7[%c0_18, %c0_19, %c0_20] : memref<1x30x128xf32, #tpu.memory_space<vmem>>, vector<1x30x128xf32>
    tpu.vector_store %arg7[%c0_18, %c0_19, %c0_20], %30 {strides = array<i32>} : memref<1x30x128xf32, #tpu.memory_space<vmem>>, vector<1x30x128xf32>,
    return
  }
  func.func @transform_0(%arg0: i32, %arg1: i32) -> (i32, i32) {
    %c0_i32 = arith.constant 0 : i32
    %c0_i32_0 = arith.constant 0 : i32
    %c0_i32_1 = arith.constant 0 : i32
    return %c0_i32, %c0_i32_0 : i32, i32
  }
  func.func @transform_1(%arg0: i32, %arg1: i32) -> (i32, i32) {
    %c0_i32 = arith.constant 0 : i32
    %c0_i32_0 = arith.constant 0 : i32
    %c0_i32_1 = arith.constant 0 : i32
    return %c0_i32, %c0_i32_0 : i32, i32
  }
  func.func @transform_2(%arg0: i32, %arg1: i32) -> (i32, i32) {
    %c1_i32 = arith.constant 1 : i32
    %0 = arith.muli %arg0, %c1_i32 : i32
    %1 = arith.addi %0, %arg1 : i32
    %c0_i32 = arith.constant 0 : i32
    %c0_i32_0 = arith.constant 0 : i32
    return %c0_i32, %1 : i32, i32
  }
  func.func @transform_3(%arg0: i32, %arg1: i32) -> (i32, i32) {
    %c1_i32 = arith.constant 1 : i32
    %0 = arith.muli %arg0, %c1_i32 : i32
    %1 = arith.addi %0, %arg1 : i32
    %c0_i32 = arith.constant 0 : i32
    %c0_i32_0 = arith.constant 0 : i32
    return %c0_i32, %1 : i32, i32
  }
  func.func @transform_4(%arg0: i32, %arg1: i32) -> (i32, i32) {
    %c1_i32 = arith.constant 1 : i32
    %0 = arith.muli %arg0, %c1_i32 : i32
    %1 = arith.addi %0, %arg1 : i32
    %c0_i32 = arith.constant 0 : i32
    %c0_i32_0 = arith.constant 0 : i32
    return %c0_i32, %1 : i32, i32
  }
  func.func @transform_5(%arg0: i32, %arg1: i32) -> (i32, i32, i32) {
    %c0_i32 = arith.constant 0 : i32
    %c0_i32_0 = arith.constant 0 : i32
    %c0_i32_1 = arith.constant 0 : i32
    return %arg0, %c0_i32, %c0_i32_0 : i32, i32, i32
  }
}

</mosaic_0001>

<bundles_post_ra>
// kernel: tpu_custom_call.1
= control target key start
LH: loop header
LB: loop body
LE: loop exit
PB: predicated region body
PF: predicated region fallthrough
CT: control target
= control target key end

     0   :  { %10 = vsyncpa [#allocation3], 0  ;;  %s2125_s0 = inlined_call_operand.vmem [shape: f32[30,32], index: 0, kind: input, shape index: {}]   ;;  %s2126_s1 = inlined_call_operand.vmem [shape: f32[32,1], index: 1, kind: input, shape index: {}]   ;;  %s2127_s2 = inlined_call_operand.hbm [shape: f32[32,128], index: 2, kind: input, shape index: {}]   ;;  %s2128_s3 = inlined_call_operand.hbm [shape: f32[30,128], index: 3, kind: input, shape index: {}]   ;;  %s2129_s4 = inlined_call_operand.hbm [shape: f32[30,128], index: 4, kind: input, shape index: {}]   ;;  %s2130_s5 = inlined_call_operand.vmem [shape: f32[1,30,128], index: 5, kind: output, shape index: {}]  }
   0x1   :  { %11 = vsyncpa [#allocation5], 0  ;;  %s1344_s18 = smov [#allocation4]   ;;  %s1345_s20 = smov [#allocation2]  }
   0x2   :  { %s39_s19 = sshll.u32 %s1344_s18, 4  ;;  %s24_s21 = sshll.u32 %s1345_s20, 4  ;;  %s40_s19 = int_to_ptr.vmem [resolvable:$true] %s39_s19  ;;  %s1387_s21 = int_to_ptr.vmem [resolvable:$true] %s24_s21 }
   0x3   :  { %s1274_s24 = scalar_lea.hbm %s2128_s3, 512 }
   0x4   :  { %p1275_p0 = scmp.ne.s32.totalorder %s2128_s3, %s1274_s24  ;;  %p1278_p1 = scmp.lt.u32.totalorder %s1274_s24, %s2128_s3 }
   0x6   :  { %p1280_p2 = pnand %p1278_p1, %p1275_p0 }
   0x8   :  { %1283 = shalt.err (!%p1280_p2)
}
   0x9   :  { %s1284_s29 = scalar_lea.vmem %s40_s19, 512  ;;  %p1289_p4 = scmp.lt.s32.totalorder %s40_s19, %s40_s19 }
   0xa   :  { %p1285_p3 = scmp.ne.s32.totalorder %s40_s19, %s1284_s29  ;;  %p1290_p5 = scmp.lt.s32.totalorder %s1284_s29, %s1284_s29 }
   0xc   :  { %p1291_p6 = por %p1290_p5, %p1289_p4 }
   0xe   :  { %p1292_p7 = pnand %p1291_p6, %p1285_p3 }
  0x10   :  { %1295 = shalt.err (!%p1292_p7)
}
  0x11   :  { %s1346_s30 = smov 128   ;;  %s1347_s6 = smov 8  }
  0x12   :  { %45 = dma.hbm_to_vmem [thread:$0]  %s2128_s3, 512, %s40_s19, [#allocation5], %s1346_s30, %s1346_s30, %s1347_s6  }
  0x13   :  { %s1296_s11 = scalar_lea.hbm %s2127_s2, 512 }
  0x14   :  { %p1297_p8 = scmp.ne.s32.totalorder %s2127_s2, %s1296_s11  ;;  %p1300_p9 = scmp.lt.u32.totalorder %s1296_s11, %s2127_s2 }
  0x16   :  { %p1302_p10 = pnand %p1300_p9, %p1297_p8 }
  0x18   :  { %1305 = shalt.err (!%p1302_p10)
}
  0x19   :  { %s1306_s16 = scalar_lea.vmem %s1387_s21, 512  ;;  %p1311_p12 = scmp.lt.s32.totalorder %s1387_s21, %s1387_s21 }
  0x1a   :  { %p1307_p11 = scmp.ne.s32.totalorder %s1387_s21, %s1306_s16  ;;  %p1312_p13 = scmp.lt.s32.totalorder %s1306_s16, %s1306_s16 }
  0x1c   :  { %p1313_p0 = por %p1312_p13, %p1311_p12 }
  0x1e   :  { %p1314_p1 = pnand %p1313_p0, %p1307_p11 }
  0x20   :  { %1317 = shalt.err (!%p1314_p1)
}
  0x21   :  { %30 = dma.hbm_to_vmem [thread:$0]  %s2127_s2, 512, %s1387_s21, [#allocation3], %s1346_s30, %s1346_s30, %s1347_s6  }
  0x22   :  { %s1348_s18 = smov [#allocation6]   ;;  %s1318_s23 = scalar_lea.hbm %s2129_s4, 512 }
  0x23   :  { %s54_s19 = sshll.u32 %s1348_s18, 4  ;;  %p1319_p2 = scmp.ne.s32.totalorder %s2129_s4, %s1318_s23  ;;  %s55_s19 = int_to_ptr.vmem [resolvable:$true] %s54_s19 }
  0x24   :  { %p1322_p3 = scmp.lt.u32.totalorder %s1318_s23, %s2129_s4 }
  0x26   :  { %p1324_p4 = pnand %p1322_p3, %p1319_p2 }
  0x28   :  { %1327 = shalt.err (!%p1324_p4)
}
  0x29   :  { %s1328_s28 = scalar_lea.vmem %s55_s19, 512  ;;  %p1333_p6 = scmp.lt.s32.totalorder %s55_s19, %s55_s19 }
  0x2a   :  { %p1329_p5 = scmp.ne.s32.totalorder %s55_s19, %s1328_s28  ;;  %p1334_p7 = scmp.lt.s32.totalorder %s1328_s28, %s1328_s28 }
  0x2c   :  { %p1335_p8 = por %p1334_p7, %p1333_p6 }
  0x2e   :  { %p1336_p9 = pnand %p1335_p8, %p1329_p5 }
  0x30   :  { %1339 = shalt.err (!%p1336_p9)
}
  0x31   :  { %60 = dma.hbm_to_vmem [thread:$0]  %s2129_s4, 512, %s55_s19, [#allocation5], %s1346_s30, %s1346_s30, %s1347_s6  }
  0x32   :  { %1340 = dma.done.wait [#allocation3], 512  }
  0x33   :  { %1341 = vsyncadd [#allocation3], 4294966784 }
  0x34   :  { %1342 = dma.done.wait [#allocation5], 1024  }
  0x35   :  { %1343 = vsyncadd [#allocation5], 4294966272  ;;  %v1349_v0 = vmov 0   ;;  %v87_v1 = vld [vmem:[%s2126_s1 + $0x10] sm:$0xff]  ;;  %v85_v2 = vld [vmem:[%s2126_s1] sm:$0xff]  ;;  %vm117_vm0 = vcmask 261120  }
  0x36   :  { %1233 = vset.pattern.permute.xlu1 %v1349_v0  ;;  %1232 = vset.pattern.permute.xlu0 %v1349_v0  ;;  %v88_v3 = vld [vmem:[%s2126_s1 + $0x18] sm:$0xff]  ;;  %v86_v4 = vld [vmem:[%s2126_s1 + $0x8] sm:$0xff]  ;;  %v113_v5 = vld [vmem:[%s2125_s0] sm:$0xff]  ;;  %v1350_v7 = vmov 0.0   ;;  %v1351_v36 = vmov 2102212464  }
  0x37   :  { %101 = vperm.xlu1 %1233, %v87_v1   ;;  %91 = vperm.xlu0 %1232, %v85_v2   ;;  %v115_v6 = vld [vmem:[%s2125_s0 + $0x10] sm:$0xff]  ;;  %80 = vst [vmem:[%s2130_s5 + $0x18] sm:$0x3f] %v1350_v7  ;;  %v81_v11 = vld [vmem:[#allocation2] sm:$0xff]  ;;  %v84_v12 = vld [vmem:[#allocation2 + $0x18] sm:$0xff] }
  0x38   :  { %1169 = vmatprep.mubr.msk.f32.mxu0 %vm117_vm0, %v113_v5  ;;  %1172 = vmatprep.mubr.msk.f32.mxu1 %vm117_vm0, %v115_v6  ;;  %v83_v10 = vld [vmem:[#allocation2 + $0x10] sm:$0xff]  ;;  %v82_v13 = vld [vmem:[#allocation2 + $0x8] sm:$0xff]  ;;  %v116_v23 = vld [vmem:[%s2125_s0 + $0x18] sm:$0x3f]  ;;  %v1352_v38 = vmov 920167782  }
  0x39   :  { %v114_v22 = vld [vmem:[%s2125_s0 + $0x8] sm:$0xff]  ;;  %v642_v31 = vld [vmem:[#allocation4 + $0x18] sm:$0x3f]  ;;  %v1353_v43 = vmov 683565275  }
  0x3a   :  { %v640_v24 = vld [vmem:[#allocation4 + $0x8] sm:$0xff]  ;;  %v1473_v34 = vmul.f32 1.5707964, %v642_v31  ;;  %v1354_v45 = vmov 2475754826  }
  0x3b   :  { %106 = vperm.xlu1 %1233, %v88_v3   ;;  %96 = vperm.xlu0 %1232, %v86_v4   ;;  %v1470_v25 = vmul.f32 1.5707964, %v640_v24  ;;  %v1355_v48 = vmov 2131351028   ;;  %v1356_v58 = vmov 1326507024  }
  0x3c   :  { %v962_v40 = vand.u32 2139095040, %v1473_v34 }
  0x3d   :  { %v754_v26 = vand.u32 2139095040, %v1470_v25  ;;  %v751_v35 = vand.u32 2147483647, %v1470_v25 }
  0x3e   :  { %v963_v2 = vshrl.u32 %v962_v40, 23 }
  0x3f   :  { %v755_v27 = vshrl.u32 %v754_v26, 23  ;;  %v758_v41 = vand.u32 8388607, %v751_v35 }
  0x41   :  { %v1141_v28 = vadd.s32 4294967169, %v755_v27  ;;  %v759_v52 = vor.u32 8388608, %v758_v41 }
  0x43   :  { %v761_v29 = vadd.s32 1, %v1141_v28  ;;  %v799_v60 = vshll.u32 %v759_v52, 8 }
  0x45   :  { %vm762_vm1 = vcmp.gt.s32.totalorder %v761_v29, 0 }
  0x46   :  { %v763_v30 = vsel %vm762_vm1, %v761_v29, 0 }
  0x47   :  { %v765_v32 = vand.u32 31, %v763_v30  ;;  %v764_v42 = vshrl.u32 %v763_v30, 5 }
  0x49   :  { %v766_v33 = vsub.s32 32, %v765_v32  ;;  %v777_v37 = vshll.u32 %v1351_v36, %v765_v32  ;;  %v768_v44 = vshll.u32 %v1353_v43, %v765_v32  ;;  %v771_v47 = vshll.u32 %v1354_v45, %v765_v32 }
  0x4a   :  { %v774_v50 = vshll.u32 %v1355_v48, %v765_v32  ;;  %v780_v55 = vshll.u32 %v1352_v38, %v765_v32  ;;  %vm783_vm2 = vcmp.lt.s32.totalorder %v764_v42, 1  ;;  %vm784_vm3 = vcmp.lt.s32.totalorder %v764_v42, 2 }
  0x4b   :  { %v778_v39 = vshrl.u32 %v1352_v38, %v766_v33  ;;  %v769_v46 = vshrl.u32 %v1354_v45, %v766_v33  ;;  %v772_v49 = vshrl.u32 %v1355_v48, %v766_v33  ;;  %v775_v51 = vshrl.u32 %v1351_v36, %v766_v33 }
  0x4c   :  { %v781_v59 = vshrl.u32 %v1356_v58, %v766_v33  ;;  %vm785_vm4 = vcmp.lt.s32.totalorder %v764_v42, 3  ;;  %vm786_vm5 = vcmp.lt.s32.totalorder %v764_v42, 4  ;;  %v767_v3 = vshrl.u32 %v1353_v43, %v766_v33 }
  0x4d   :  { %v770_v53 = vor.u32 %v769_v46, %v768_v44  ;;  %v779_v54 = vor.u32 %v778_v39, %v777_v37  ;;  %v773_v56 = vor.u32 %v772_v49, %v771_v47  ;;  %v776_v57 = vor.u32 %v775_v51, %v774_v50 }
  0x4e   :  { %v782_v61 = vor.u32 %v781_v59, %v780_v55 }
  0x4f   :  { %v791_v62 = vsel %vm783_vm2, %v770_v53, %v773_v56  ;;  %v792_v63 = vsel %vm786_vm5, %v779_v54, 920167782  ;;  %v795_v1 = vsel %vm783_vm2, %v773_v56, %v776_v57  ;;  %v788_v6 = vsel %vm786_vm5, %v776_v57, 2102212464 }
  0x50   :  { %v793_v0 = vsel %vm785_vm4, %v776_v57, %v792_v63  ;;  %v796_v5 = vsel %vm786_vm5, %v782_v61, 1326507024 }
  0x51   :  { %v794_v4 = vsel %vm784_vm3, %v791_v62, %v793_v0  ;;  %v797_v7 = vsel %vm785_vm4, %v779_v54, %v796_v5 }
  0xb6   :  { %v102_v8 = vpop.permute.xlu1 %101  ;;  %v92_v9 = vpop.permute.xlu0 %91 }
  0xb7   :  { %v111_v16 = vadd.f32 %v102_v8, %v83_v10  ;;  %v109_v17 = vadd.f32 %v92_v9, %v81_v11  ;;  %v1495_v8 = vmul.u32.u64.low %v799_v60, %v794_v4  ;;  %v1496_v9 = vmul.u32.u64.high %v799_v60, %v794_v4, %v1495_v8 }
  0xb8   :  { %v787_v10 = vsel %vm783_vm2, %v767_v3, %v770_v53  ;;  %v789_v11 = vsel %vm785_vm4, %v773_v56, %v788_v6 }
  0xba   :  { %v107_v14 = vpop.permute.xlu1 %106  ;;  %v97_v15 = vpop.permute.xlu0 %96 }
  0xbb   :  { %v112_v18 = vadd.f32 %v107_v14, %v84_v12  ;;  %v110_v19 = vadd.f32 %v97_v15, %v82_v13  ;;  %v798_v12 = vsel %vm784_vm3, %v795_v1, %v797_v7  ;;  %v1149_v13 = vadd.s32 4294967169, %v963_v2 }
  0xbc   :  { %v790_v14 = vsel %vm784_vm3, %v787_v10, %v789_v11 }
  0xbd   :  { %v1175_v20 = vpack.c.bf16 %v110_v19, %v109_v17  ;;  %v1179_v21 = vpack.c.bf16 %v112_v18, %v111_v16  ;;  %v1503_v15 = vmul.u32.u64.low %v799_v60, %v798_v12  ;;  %v1504_v16 = vmul.u32.u64.high %v799_v60, %v798_v12, %v1503_v15 }
  0xbe   :  { %v959_v17 = vand.u32 2147483647, %v1473_v34  ;;  %v969_v18 = vadd.s32 1, %v1149_v13  ;;  %v806_v19 = vmul.u32 %v799_v60, %v790_v14 }
  0xbf   :  { %1176 = vmatprep.subr.bf16.mxu0 %v1175_v20  ;;  %1183 = vmatprep.subr.bf16.mxu1 %v1175_v20  ;;  %vm808_vm7 = vc.u32 %v1504_v16, %v1495_v8 }
  0xc0   :  { %1178 = vmatpush3.bf16.msra.mxu0 %v1175_v20  ;;  %1185 = vmatpush3.bf16.msra.mxu1 %v1175_v20  ;;  %v809_v20 = vadd.s32 1, %v1496_v9  ;;  %vm970_vm6 = vcmp.gt.s32.totalorder %v969_v18, 0 }
  0xc1   :  { %1180 = vmatprep.subr.bf16.mxu0 %v1179_v21  ;;  %1184 = vmatprep.subr.bf16.mxu1 %v1179_v21  ;;  %v971_v24 = vsel %vm970_vm6, %v969_v18, 0 }
  0xc2   :  { %v810_v27 = vsel %vm808_vm7, %v809_v20, %v1496_v9  ;;  %v972_v28 = vshrl.u32 %v971_v24, 5  ;;  %v973_v29 = vand.u32 31, %v971_v24 }
  0xc3   :  { %v811_v30 = vadd.s32 %v810_v27, %v806_v19 }
  0xc4   :  { %1182 = vmatpush3.bf16.msra.mxu0 %v1179_v21  ;;  %1186 = vmatpush3.bf16.msra.mxu1 %v1179_v21  ;;  %v966_v21 = vand.u32 8388607, %v959_v17  ;;  %v974_v33 = vsub.s32 32, %v973_v29  ;;  %v976_v37 = vshll.u32 %v1353_v43, %v973_v29  ;;  %v979_v39 = vshll.u32 %v1354_v45, %v973_v29 }
  0xc5   :  { %v982_v40 = vshll.u32 %v1355_v48, %v973_v29  ;;  %v812_v41 = vadd.s32 536870912, %v811_v30  ;;  %v985_v42 = vshll.u32 %v1351_v36, %v973_v29  ;;  %v988_v44 = vshll.u32 %v1352_v38, %v973_v29 }
  0xc6   :  { %vm991_vm8 = vcmp.lt.s32.totalorder %v972_v28, 1  ;;  %v975_v46 = vshrl.u32 %v1353_v43, %v974_v33  ;;  %v977_v47 = vshrl.u32 %v1354_v45, %v974_v33  ;;  %v980_v49 = vshrl.u32 %v1355_v48, %v974_v33 }
  0xc7   :  { %1170 = vmatmul.mubr.msk.f32.vlgmr.msra.gmra.mrb[0].mxu0 %vm117_vm0, %v114_v22  ;;  %1173 = vmatmul.mubr.msk.f32.vlgmr.msra.gmra.mrb[0].mxu1 %vm117_vm0, %v116_v23  ;;  %v639_v22 = vld [vmem:[#allocation4] sm:$0xff]  ;;  %v967_v23 = vor.u32 8388608, %v966_v21  ;;  %v983_v50 = vshrl.u32 %v1351_v36, %v974_v33  ;;  %v1525_v51 = vshrl.u32 %v812_v41, 30  ;;  %v986_v52 = vshrl.u32 %v1352_v38, %v974_v33 }
  0xc8   :  { %v1512_v26 = vmul.f32 1.5707964, %v639_v22  ;;  %v989_v53 = vshrl.u32 %v1356_v58, %v974_v33  ;;  %vm992_vm9 = vcmp.lt.s32.totalorder %v972_v28, 2  ;;  %v978_v54 = vor.u32 %v977_v47, %v976_v37 }
  0xc9   :  { %v1007_v31 = vshll.u32 %v967_v23, 8  ;;  %v981_v55 = vor.u32 %v980_v49, %v979_v39  ;;  %v984_v56 = vor.u32 %v983_v50, %v982_v40  ;;  %vm993_vm10 = vcmp.lt.s32.totalorder %v972_v28, 3 }
  0xca   :  { %v650_v32 = vand.u32 2139095040, %v1512_v26  ;;  %v814_v57 = vshll.u32 %v1525_v51, 30  ;;  %v987_v59 = vor.u32 %v986_v52, %v985_v42  ;;  %v990_v60 = vor.u32 %v989_v53, %v988_v44 }
  0xcb   :  { %vm994_vm11 = vcmp.lt.s32.totalorder %v972_v28, 4  ;;  %v995_v61 = vsel %vm991_vm8, %v975_v46, %v978_v54  ;;  %v999_v63 = vsel %vm991_vm8, %v978_v54, %v981_v55  ;;  %v1003_v0 = vsel %vm991_vm8, %v981_v55, %v984_v56 }
  0xcc   :  { %v996_v62 = vsel %vm994_vm11, %v984_v56, 2102212464  ;;  %v1000_v2 = vsel %vm994_vm11, %v987_v59, 920167782  ;;  %v1004_v3 = vsel %vm994_vm11, %v990_v60, 1326507024  ;;  %v1533_v4 = vsub.s32 %v811_v30, %v814_v57 }
  0xcd   :  { %v997_v1 = vsel %vm993_vm10, %v981_v55, %v996_v62  ;;  %v1001_v5 = vsel %vm993_vm10, %v984_v56, %v1000_v2  ;;  %v1005_v6 = vsel %vm993_vm10, %v987_v59, %v1004_v3  ;;  %v651_v7 = vshrl.u32 %v650_v32, 23 }
  0xce   :  { %v998_v9 = vsel %vm992_vm9, %v995_v61, %v997_v1  ;;  %v1002_v10 = vsel %vm992_vm9, %v999_v63, %v1001_v5  ;;  %v1006_v11 = vsel %vm992_vm9, %v1003_v0, %v1005_v6  ;;  %v817_v19 = vsub.s32 0, %v1533_v4 }
  0xcf   :  { %v1538_v12 = vmul.u32.u64.low %v1007_v31, %v1006_v11  ;;  %v1539_v13 = vmul.u32.u64.high %v1007_v31, %v1006_v11, %v1538_v12  ;;  %v1541_v14 = vmul.u32.u64.low %v1007_v31, %v1002_v10  ;;  %v1542_v15 = vmul.u32.u64.high %v1007_v31, %v1002_v10, %v1541_v14 }
  0xd0   :  { %v1137_v18 = vadd.s32 4294967169, %v651_v7  ;;  %v1014_v20 = vmul.u32 %v1007_v31, %v998_v9  ;;  %v647_v21 = vand.u32 2147483647, %v1512_v26  ;;  %v1142_v24 = vmin.u32 %v817_v19, %v1533_v4  ;;  %v641_v12 = vld [vmem:[#allocation4 + $0x10] sm:$0xff] }
  0xd1   :  { %vm1016_vm12 = vc.u32 %v1539_v13, %v1541_v14  ;;  %v1017_v23 = vadd.s32 1, %v1542_v15  ;;  %vm753_vm8 = vcmp.lt.s32.totalorder %v1470_v25, 0 }
  0xd2   :  { %v657_v22 = vadd.s32 1, %v1137_v18  ;;  %v654_v30 = vand.u32 8388607, %v647_v21  ;;  %v819_v37 = vclz %v1142_v24 }
  0xd3   :  { %v1018_v27 = vsel %vm1016_vm12, %v1017_v23, %v1542_v15  ;;  %vm1629_vm12 = vcmp.le.f32.partialorder %v751_v35, 0.7853982 }
  0xd4   :  { %vm658_vm13 = vcmp.gt.s32.totalorder %v657_v22, 0  ;;  %v1019_v29 = vadd.s32 %v1018_v27, %v1014_v20  ;;  %v655_v42 = vor.u32 8388608, %v654_v30  ;;  %v1143_v59 = vadd.s32 4294967294, %v819_v37 }
  0xd5   :  { %v659_v28 = vsel %vm658_vm13, %v657_v22, 0  ;;  %vm961_vm13 = vcmp.lt.s32.totalorder %v1473_v34, 0 }
  0xd6   :  { %v661_v32 = vand.u32 31, %v659_v28  ;;  %v1020_v31 = vadd.s32 536870912, %v1019_v29  ;;  %v660_v44 = vshrl.u32 %v659_v28, 5  ;;  %v695_v62 = vshll.u32 %v655_v42, 8 }
  0xd7   :  { %vm1144_vm2 = vcmp.lt.s32.totalorder %v1143_v59, 0 }
  0xd8   :  { %v662_v33 = vsub.s32 32, %v661_v32  ;;  %v664_v39 = vshll.u32 %v1353_v43, %v661_v32  ;;  %v667_v40 = vshll.u32 %v1354_v45, %v661_v32  ;;  %v1556_v41 = vshrl.u32 %v1020_v31, 30 }
  0xd9   :  { %v670_v46 = vshll.u32 %v1355_v48, %v661_v32  ;;  %v673_v52 = vshll.u32 %v1351_v36, %v661_v32  ;;  %v676_v57 = vshll.u32 %v1352_v38, %v661_v32  ;;  %vm679_vm14 = vcmp.lt.s32.totalorder %v660_v44, 1 }
  0xda   :  { %v665_v47 = vshrl.u32 %v1354_v45, %v662_v33  ;;  %v668_v49 = vshrl.u32 %v1355_v48, %v662_v33  ;;  %v671_v50 = vshrl.u32 %v1351_v36, %v662_v33  ;;  %v1022_v53 = vshll.u32 %v1556_v41, 30 }
  0xdb   :  { %v674_v54 = vshrl.u32 %v1352_v38, %v662_v33  ;;  %v663_v63 = vshrl.u32 %v1353_v43, %v662_v33  ;;  %v677_v1 = vshrl.u32 %v1356_v58, %v662_v33  ;;  %vm680_vm15 = vcmp.lt.s32.totalorder %v660_v44, 2 }
  0xdc   :  { %v666_v55 = vor.u32 %v665_v47, %v664_v39  ;;  %v669_v56 = vor.u32 %v668_v49, %v667_v40  ;;  %v1566_v60 = vsub.s32 %v1019_v29, %v1022_v53  ;;  %v672_v0 = vor.u32 %v671_v50, %v670_v46 }
  0xdd   :  { %v675_v61 = vor.u32 %v674_v54, %v673_v52  ;;  %vm681_vm0 = vcmp.lt.s32.totalorder %v660_v44, 3  ;;  %vm682_vm1 = vcmp.lt.s32.totalorder %v660_v44, 4  ;;  %v678_v3 = vor.u32 %v677_v1, %v676_v57 }
  0xde   :  { %v1025_v2 = vsub.s32 0, %v1566_v60  ;;  %v684_v5 = vsel %vm682_vm1, %v672_v0, 2102212464  ;;  %v687_v6 = vsel %vm679_vm14, %v666_v55, %v669_v56  ;;  %v683_v10 = vsel %vm679_vm14, %v663_v63, %v666_v55 }
  0xdf   :  { %v688_v7 = vsel %vm682_vm1, %v675_v61, 920167782  ;;  %v685_v18 = vsel %vm681_vm0, %v669_v56, %v684_v5  ;;  %v691_v20 = vsel %vm679_vm14, %v669_v56, %v672_v0  ;;  %v692_v22 = vsel %vm682_vm1, %v678_v3, 1326507024 }
  0xe0   :  { %v1150_v9 = vmin.u32 %v1025_v2, %v1566_v60  ;;  %v689_v11 = vsel %vm681_vm0, %v672_v0, %v688_v7  ;;  %v693_v28 = vsel %vm681_vm0, %v675_v61, %v692_v22  ;;  %v1583_v29 = vmul.f32 1.5707964, %v641_v12 }
  0xe1   :  { %v690_v19 = vsel %vm680_vm15, %v687_v6, %v689_v11  ;;  %v686_v30 = vsel %vm680_vm15, %v683_v10, %v685_v18  ;;  %v694_v32 = vsel %vm680_vm15, %v691_v20, %v693_v28  ;;  %v822_v31 = vsel %vm1144_vm2, 0, %v1143_v59 }
  0xe2   :  { %v1027_v15 = vclz %v1150_v9  ;;  %v1578_v23 = vmul.u32.u64.low %v695_v62, %v690_v19  ;;  %v1579_v24 = vmul.u32.u64.high %v695_v62, %v690_v19, %v1578_v23  ;;  %v702_v40 = vmul.u32 %v695_v62, %v686_v30 }
  0xe3   :  { %v1587_v33 = vmul.u32.u64.low %v695_v62, %v694_v32  ;;  %v1588_v37 = vmul.u32.u64.high %v695_v62, %v694_v32, %v1587_v33  ;;  %v858_v42 = vand.u32 2139095040, %v1583_v29  ;;  %v827_v46 = vsub.s32 4294967266, %v822_v31 }
  0xe4   :  { %v1151_v27 = vadd.s32 4294967294, %v1027_v15  ;;  %v705_v39 = vadd.s32 1, %v1579_v24  ;;  %v807_v52 = vadd.s32 %v1495_v8, %v1504_v16  ;;  %v823_v53 = vsub.s32 32, %v822_v31 }
  0xe5   :  { %vm704_vm4 = vc.u32 %v1588_v37, %v1578_v23  ;;  %v859_v50 = vshrl.u32 %v858_v42, 23  ;;  %v828_v54 = vadd.s32 127, %v827_v46  ;;  %v824_v61 = vshll.u32 %v1533_v4, %v822_v31 }
  0xe6   :  { %vm1152_vm3 = vcmp.lt.s32.totalorder %v1151_v27, 0  ;;  %v706_v49 = vsel %vm704_vm4, %v705_v39, %v1579_v24  ;;  %v825_v63 = vshrl.u32 %v807_v52, %v823_v53  ;;  %v1015_v1 = vadd.s32 %v1541_v14, %v1539_v13 }
  0xe7   :  { %v1030_v47 = vsel %vm1152_vm3, 0, %v1151_v27  ;;  %v707_v44 = vadd.s32 %v706_v49, %v702_v40  ;;  %v1145_v55 = vadd.s32 4294967169, %v859_v50  ;;  %v829_v0 = vshll.u32 %v828_v54, 23 }
  0xe8   :  { %v1035_v56 = vsub.s32 4294967266, %v1030_v47  ;;  %v1031_v2 = vsub.s32 32, %v1030_v47  ;;  %v826_v7 = vor.u32 %v825_v63, %v824_v61  ;;  %v1032_v4 = vshll.u32 %v1566_v60, %v1030_v47 }
  0xe9   :  { %v708_v57 = vadd.s32 536870912, %v707_v44  ;;  %v865_v59 = vadd.s32 1, %v1145_v55  ;;  %v830_v9 = vor.u32 4788187, %v829_v0  ;;  %v855_v22 = vand.u32 2147483647, %v1583_v29 }
  0xea   :  { %v1036_v3 = vadd.s32 127, %v1035_v56  ;;  %v1033_v10 = vshrl.u32 %v1015_v1, %v1031_v2  ;;  %v833_v13 = vcvt.s32.f32 %v826_v7  ;;  %vm1660_vm14 = vcmp.le.f32.partialorder %v959_v17, 0.7853982 }
  0xeb   :  { %v1598_v62 = vshrl.u32 %v708_v57, 30  ;;  %vm866_vm5 = vcmp.gt.s32.totalorder %v865_v59, 0  ;;  %v831_v18 = vand.u32 2147483647, %v830_v9  ;;  %v862_v49 = vand.u32 8388607, %v855_v22 }
  0xec   :  { %v867_v16 = vsel %vm866_vm5, %v865_v59, 0  ;;  %v1037_v11 = vshll.u32 %v1036_v3, 23  ;;  %v1034_v19 = vor.u32 %v1033_v10, %v1032_v4  ;;  %v703_v4 = vadd.s32 %v1578_v23, %v1588_v37 }
  0xed   :  { %v710_v8 = vshll.u32 %v1598_v62, 30  ;;  %v869_v5 = vand.u32 31, %v867_v16  ;;  %v868_v27 = vshrl.u32 %v867_v16, 5  ;;  %v834_v39 = vmul.f32 %v833_v13, %v831_v18 }
  0xee   :  { %v1038_v20 = vor.u32 4788187, %v1037_v11  ;;  %v1041_v47 = vcvt.s32.f32 %v1034_v19  ;;  %v863_v61 = vor.u32 8388608, %v862_v49  ;;  %vm649_vm0 = vcmp.lt.s32.totalorder %v1512_v26, 0 }
  0xef   :  { %v1603_v6 = vsub.s32 %v707_v44, %v710_v8  ;;  %v870_v15 = vsub.s32 32, %v869_v5  ;;  %v872_v28 = vshll.u32 %v1353_v43, %v869_v5  ;;  %v875_v60 = vshll.u32 %v1354_v45, %v869_v5 }
  0xf0   :  { %v878_v31 = vshll.u32 %v1355_v48, %v869_v5  ;;  %v881_v42 = vshll.u32 %v1351_v36, %v869_v5  ;;  %v884_v50 = vshll.u32 %v1352_v38, %v869_v5  ;;  %v1039_v52 = vand.u32 2147483647, %v1038_v20 }
  0xf1   :  { %v713_v12 = vsub.s32 0, %v1603_v6  ;;  %v873_v30 = vshrl.u32 %v1354_v45, %v870_v15  ;;  %v876_v32 = vshrl.u32 %v1355_v48, %v870_v15  ;;  %v879_v33 = vshrl.u32 %v1351_v36, %v870_v15 }
  0xf2   :  { %v882_v46 = vshrl.u32 %v1352_v38, %v870_v15  ;;  %v885_v44 = vshrl.u32 %v1356_v58, %v870_v15  ;;  %vm890_vm7 = vcmp.lt.s32.totalorder %v868_v27, 4  ;;  %v835_v59 = vxor.u32 2147483648, %v834_v39 }
  0xf3   :  { %v1138_v14 = vmin.u32 %v713_v12, %v1603_v6  ;;  %v874_v53 = vor.u32 %v873_v30, %v872_v28  ;;  %v877_v56 = vor.u32 %v876_v32, %v875_v60  ;;  %v880_v57 = vor.u32 %v879_v33, %v878_v31 }
  0xf4   :  { %v883_v54 = vor.u32 %v882_v46, %v881_v42  ;;  %vm887_vm9 = vcmp.lt.s32.totalorder %v868_v27, 1  ;;  %vm889_vm10 = vcmp.lt.s32.totalorder %v868_v27, 3  ;;  %v871_v63 = vshrl.u32 %v1353_v43, %v870_v15 }
  0xf5   :  { %v715_v24 = vclz %v1138_v14  ;;  %v886_v0 = vor.u32 %v885_v44, %v884_v50  ;;  %v1042_v2 = vmul.f32 %v1041_v47, %v1039_v52  ;;  %vm888_vm11 = vcmp.lt.s32.totalorder %v868_v27, 2 }
  0xf6   :  { %v896_v1 = vsel %vm890_vm7, %v883_v54, 920167782  ;;  %v892_v8 = vsel %vm890_vm7, %v880_v57, 2102212464  ;;  %v895_v16 = vsel %vm887_vm9, %v874_v53, %v877_v56  ;;  %v836_v9 = vsel %vm753_vm8, %v835_v59, %v834_v39 }
  0xf7   :  { %v1139_v40 = vadd.s32 4294967294, %v715_v24  ;;  %v897_v5 = vsel %vm889_vm10, %v880_v57, %v896_v1  ;;  %v891_v11 = vsel %vm887_vm9, %v871_v63, %v874_v53  ;;  %v900_v12 = vsel %vm890_vm7, %v886_v0, 1326507024 }
  0xf8   :  { %v903_v15 = vshll.u32 %v863_v61, 8  ;;  %v893_v13 = vsel %vm889_vm10, %v877_v56, %v892_v8  ;;  %v898_v35 = vsel %vm888_vm11, %v895_v16, %v897_v5  ;;  %v899_v14 = vsel %vm887_vm9, %v877_v56, %v880_v57 }
  0xf9   :  { %vm1140_vm6 = vcmp.lt.s32.totalorder %v1139_v40, 0  ;;  %v1043_v19 = vxor.u32 2147483648, %v1042_v2  ;;  %v901_v20 = vsel %vm889_vm10, %v883_v54, %v900_v12  ;;  %v837_v24 = vsub.s32 4, %v1525_v51 }
  0xfa   :  { %v718_v55 = vsel %vm1140_vm6, 0, %v1139_v40  ;;  %v839_v23 = vsel %vm1629_vm12, %v1470_v25, %v836_v9  ;;  %v894_v28 = vsel %vm888_vm11, %v891_v11, %v893_v13  ;;  %v902_v30 = vsel %vm888_vm11, %v899_v14, %v901_v20 }
  0xfb   :  { %v723_v3 = vsub.s32 4294967266, %v718_v55  ;;  %v719_v10 = vsub.s32 32, %v718_v55  ;;  %v720_v37 = vshll.u32 %v1603_v6, %v718_v55  ;;  %v1044_v6 = vsel %vm961_vm13, %v1043_v19, %v1042_v2 }
  0xfc   :  { %v1651_v60 = vmul.u32.u64.low %v903_v15, %v898_v35  ;;  %v1652_v32 = vmul.u32.u64.high %v903_v15, %v898_v35, %v1651_v60  ;;  %v1655_v39 = vmul.u32.u64.low %v903_v15, %v902_v30  ;;  %v1656_v40 = vmul.u32.u64.high %v903_v15, %v902_v30, %v1655_v39 }
  0xfd   :  { %v724_v18 = vadd.s32 127, %v723_v3  ;;  %v721_v31 = vshrl.u32 %v703_v4, %v719_v10  ;;  %1234 = vcosq.f32 %v839_v23  ;;  %v910_v27 = vmul.u32 %v903_v15, %v894_v28 }
  0xfe   :  { %v838_v46 = vsel %vm753_vm8, %v837_v24, %v1525_v51  ;;  %1236 = vsinq.f32 %v839_v23  ;;  %v1045_v47 = vsub.s32 4, %v1556_v41  ;;  %v913_v49 = vadd.s32 1, %v1652_v32 }
  0xff   :  { %v725_v33 = vshll.u32 %v724_v18, 23  ;;  %v1047_v17 = vsel %vm1660_vm14, %v1473_v34, %v1044_v6  ;;  %v722_v50 = vor.u32 %v721_v31, %v720_v37  ;;  %vm912_vm15 = vc.u32 %v1656_v40, %v1651_v60 }
 0x100   :  { %v914_v52 = vsel %vm912_vm15, %v913_v49, %v1652_v32  ;;  %v840_v51 = vsel %vm1629_vm12, 0, %v838_v46  ;;  %v1046_v54 = vsel %vm961_vm13, %v1045_v47, %v1556_v41  ;;  %1238 = vcosq.f32 %v1047_v17 }
 0x101   :  { %v726_v44 = vor.u32 4788187, %v725_v33  ;;  %v915_v53 = vadd.s32 %v914_v52, %v910_v27  ;;  %1240 = vsinq.f32 %v1047_v17  ;;  %v729_v56 = vcvt.s32.f32 %v722_v50  ;;  %v1068_v27 = vld [vmem:[#allocation6 + $0x8] sm:$0xff] }
 0x102   :  { %v844_v59 = vadd.s32 3, %v840_v51  ;;  %v1048_v63 = vsel %vm1660_vm14, 0, %v1046_v54  ;;  %vm1693_vm4 = vcmp.le.f32.partialorder %v647_v21, 0.7853982  ;;  %v733_v20 = vsub.s32 4, %v1598_v62 }
 0x103   :  { %v727_v55 = vand.u32 2147483647, %v726_v44  ;;  %v916_v57 = vadd.s32 536870912, %v915_v53  ;;  %v1052_v16 = vadd.s32 3, %v1048_v63  ;;  %vm843_vm7 = vweird.f32 %v1470_v25  ;;  %v1070_v44 = vld [vmem:[#allocation6 + $0x18] sm:$0x3f] }
 0x104   :  { %v845_v8 = vand.u32 3, %v844_v59  ;;  %v734_v30 = vsel %vm649_vm0, %v733_v20, %v1598_v62  ;;  %vm1051_vm9 = vweird.f32 %v1473_v34  ;;  %vm1072_vm10 = vcmp.gt.f32.partialorder %v1068_v27, 0.5 }
 0x105   :  { %v1682_v61 = vshrl.u32 %v916_v57, 30  ;;  %v730_v1 = vmul.f32 %v729_v56, %v727_v55  ;;  %v1053_v11 = vand.u32 3, %v1052_v16  ;;  %v736_v39 = vsel %vm1693_vm4, 0, %v734_v30 }
 0x106   :  { %vm847_vm1 = vcmp.eq.s32.totalorder %v845_v8, 0  ;;  %vm850_vm2 = vcmp.eq.s32.totalorder %v845_v8, 2  ;;  %vm846_vm3 = vcmp.lt.s32.totalorder %v845_v8, 2  ;;  %v740_v46 = vadd.s32 3, %v736_v39 }
 0x107   :  { %v1235_v0 = vpop.eup %1234  ;;  %v918_v2 = vshll.u32 %v1682_v61, 30  ;;  %v731_v41 = vxor.u32 2147483648, %v730_v1  ;;  %vm1055_vm5 = vcmp.eq.s32.totalorder %v1053_v11, 0  ;;  %vm1058_vm6 = vcmp.eq.s32.totalorder %v1053_v11, 2 }
 0x108   :  { %v1237_v3 = vpop.eup %1236  ;;  %v851_v4 = vxor.u32 2147483648, %v1235_v0  ;;  %vm1054_vm8 = vcmp.lt.s32.totalorder %v1053_v11, 2  ;;  %v741_v52 = vand.u32 3, %v740_v46  ;;  %vm1074_vm12 = vcmp.gt.f32.partialorder %v1070_v44, 0.5 }
 0x109   :  { %v1687_v5 = vsub.s32 %v915_v53, %v918_v2  ;;  %v848_v9 = vxor.u32 2147483648, %v1237_v3  ;;  %v732_v18 = vsel %vm649_vm0, %v731_v41, %v730_v1 }
 0x10a   :  { %v1239_v7 = vpop.eup %1238  ;;  %v852_v35 = vsel %vm850_vm2, %v851_v4, %v1237_v3  ;;  %v735_v24 = vsel %vm1693_vm4, %v1512_v26, %v732_v18  ;;  %vm746_vm13 = vcmp.eq.s32.totalorder %v741_v52, 2  ;;  %vm743_vm14 = vcmp.eq.s32.totalorder %v741_v52, 0 }
 0x10b   :  { %v1241_v10 = vpop.eup %1240  ;;  %v921_v12 = vsub.s32 0, %v1687_v5  ;;  %v849_v13 = vsel %vm847_vm1, %v1235_v0, %v848_v9  ;;  %v1059_v19 = vxor.u32 2147483648, %v1239_v7  ;;  %1242 = vcosq.f32 %v735_v24 }
 0x10c   :  { %v1056_v14 = vxor.u32 2147483648, %v1241_v10  ;;  %v853_v23 = vsel %vm846_vm3, %v849_v13, %v852_v35  ;;  %1244 = vsinq.f32 %v735_v24  ;;  %vm742_vm15 = vcmp.lt.s32.totalorder %v741_v52, 2 }
 0x10d   :  { %v1146_v21 = vmin.u32 %v921_v12, %v1687_v5  ;;  %v1060_v28 = vsel %vm1058_vm6, %v1059_v19, %v1241_v10  ;;  %v854_v32 = vsel %vm843_vm7, nan, %v853_v23  ;;  %v911_v13 = vadd.s32 %v1651_v60, %v1656_v40 }
 0x10e   :  { %v1057_v37 = vsel %vm1055_vm5, %v1239_v7, %v1056_v14  ;;  %v1064_v42 = vand.u32 2147483647, %v854_v32  ;;  %vm739_vm7 = vweird.f32 %v1512_v26 }
 0x10f   :  { %v923_v31 = vclz %v1146_v21  ;;  %v1061_v33 = vsel %vm1054_vm8, %v1057_v37, %v1060_v28 }
 0x110   :  { %v1062_v25 = vsel %vm1051_vm9, nan, %v1061_v33  ;;  %v1076_v47 = vsub.f32 1.0, %v1064_v42 }
 0x111   :  { %v1147_v6 = vadd.s32 4294967294, %v923_v31  ;;  %v1066_v49 = vand.u32 2147483647, %v1062_v25 }
 0x112   :  { %v1080_v56 = vsel %vm1072_vm10, %v1064_v42, %v1076_v47 }
 0x113   :  { %vm1148_vm11 = vcmp.lt.s32.totalorder %v1147_v6, 0  ;;  %v1078_v57 = vsub.f32 1.0, %v1066_v49  ;;  %1246 = vlog2.f32 %v1080_v56 }
 0x114   :  { %v1719_v63 = vsel %vm1148_vm11, 0, %v1147_v6 }
 0x115   :  { %v1243_v62 = vpop.eup %1242  ;;  %v931_v9 = vsub.s32 4294967266, %v1719_v63  ;;  %v1082_v11 = vsel %vm1074_vm12, %v1066_v49, %v1078_v57  ;;  %v927_v20 = vsub.s32 32, %v1719_v63  ;;  %v928_v40 = vshll.u32 %v1687_v5, %v1719_v63 }
 0x116   :  { %v1245_v53 = vpop.eup %1244  ;;  %v747_v2 = vxor.u32 2147483648, %v1243_v62  ;;  %1248 = vlog2.f32 %v1082_v11 }
 0x117   :  { %v744_v16 = vxor.u32 2147483648, %v1245_v53  ;;  %v1734_v23 = vadd.s32 127, %v931_v9  ;;  %v1742_v33 = vshrl.u32 %v911_v13, %v927_v20 }
 0x118   :  { %v748_v18 = vsel %vm746_vm13, %v747_v2, %v1245_v53 }
 0x119   :  { %v745_v19 = vsel %vm743_vm14, %v1243_v62, %v744_v16  ;;  %v933_v6 = vshll.u32 %v1734_v23, 23 }
 0x11a   :  { %v1738_v31 = vsel %vm742_vm15, %v745_v19, %v748_v18 }
 0x19a   :  { %v1171_v17 = vpop.f32.mrb[0].mxu0  ;;  %v1174_v50 = vpop.f32.mrb[0].mxu1 }
 0x19b   :  { %v1711_v34 = vmul.f32 1.5707964, %v1171_v17  ;;  %v1713_v51 = vmul.f32 1.5707964, %v1174_v50  ;;  %v196_v54 = vpop.f32.mrb[1].mxu0  ;;  %v1715_v55 = vpop.f32.mrb[1].mxu1 }
 0x19c   :  { %v1717_v59 = vmul.f32 1.5707964, %v196_v54 }
 0x19d   :  { %v323_v0 = vand.u32 2147483647, %v1711_v34  ;;  %v326_v1 = vand.u32 2139095040, %v1711_v34  ;;  %v531_v3 = vand.u32 2147483647, %v1713_v51  ;;  %v534_v8 = vand.u32 2139095040, %v1713_v51 }
 0x19e   :  { %v222_v12 = vand.u32 2139095040, %v1717_v59  ;;  %v219_v30 = vand.u32 2147483647, %v1717_v59  ;;  %vm325_vm14 = vcmp.lt.s32.totalorder %v1711_v34, 0 }
 0x19f   :  { %v327_v41 = vshrl.u32 %v326_v1, 23  ;;  %v330_v7 = vand.u32 8388607, %v323_v0  ;;  %v535_v4 = vshrl.u32 %v534_v8, 23  ;;  %v538_v10 = vand.u32 8388607, %v531_v3 }
 0x1a0   :  { %v223_v14 = vshrl.u32 %v222_v12, 23  ;;  %v1751_v47 = vand.u32 8388607, %v219_v30 }
 0x1a1   :  { %v1125_v15 = vadd.s32 4294967169, %v327_v41  ;;  %v1133_v35 = vadd.s32 4294967169, %v535_v4  ;;  %v331_v24 = vor.u32 8388608, %v330_v7  ;;  %v539_v37 = vor.u32 8388608, %v538_v10  ;;  %v1768_v7 = vpop.eup %1246 }
 0x1a2   :  { %v1121_v32 = vadd.s32 4294967169, %v223_v14  ;;  %v1249_v18 = vpop.eup %1248  ;;  %v227_v5 = vor.u32 8388608, %v1751_v47 }
 0x1a3   :  { %v333_v21 = vadd.s32 1, %v1125_v15  ;;  %v541_v28 = vadd.s32 1, %v1133_v35  ;;  %v1745_v27 = vshll.u32 %v331_v24, 8  ;;  %v1747_v46 = vshll.u32 %v539_v37, 8 }
 0x1a4   :  { %v1753_v49 = vadd.s32 1, %v1121_v32 }
 0x1a5   :  { %vm334_vm0 = vcmp.gt.s32.totalorder %v333_v21, 0  ;;  %vm542_vm1 = vcmp.gt.s32.totalorder %v541_v28, 0 }
 0x1a6   :  { %v335_v60 = vsel %vm334_vm0, %v333_v21, 0  ;;  %v543_v25 = vsel %vm542_vm1, %v541_v28, 0  ;;  %vm230_vm6 = vcmp.gt.s32.totalorder %v1753_v49, 0 }
 0x1a7   :  { %v336_v39 = vshrl.u32 %v335_v60, 5  ;;  %v337_v42 = vand.u32 31, %v335_v60  ;;  %v1756_v50 = vshrl.u32 %v543_v25, 5  ;;  %v545_v44 = vand.u32 31, %v543_v25 }
 0x1a9   :  { %v338_v62 = vsub.s32 32, %v337_v42  ;;  %v340_v17 = vshll.u32 %v1353_v43, %v337_v42  ;;  %v343_v52 = vshll.u32 %v1354_v45, %v337_v42  ;;  %v346_v53 = vshll.u32 %v1355_v48, %v337_v42 }
 0x1aa   :  { %v349_v54 = vshll.u32 %v1351_v36, %v337_v42  ;;  %v352_v56 = vshll.u32 %v1352_v38, %v337_v42  ;;  %vm355_vm2 = vcmp.lt.s32.totalorder %v336_v39, 1  ;;  %vm356_vm3 = vcmp.lt.s32.totalorder %v336_v39, 2 }
 0x1ab   :  { %v341_v57 = vshrl.u32 %v1354_v45, %v338_v62  ;;  %v344_v1 = vshrl.u32 %v1355_v48, %v338_v62  ;;  %v347_v2 = vshrl.u32 %v1351_v36, %v338_v62  ;;  %v339_v8 = vshrl.u32 %v1353_v43, %v338_v62 }
 0x1ac   :  { %v350_v16 = vshrl.u32 %v1352_v38, %v338_v62  ;;  %v353_v41 = vshrl.u32 %v1356_v58, %v338_v62  ;;  %v546_v11 = vsub.s32 32, %v545_v44  ;;  %vm357_vm4 = vcmp.lt.s32.totalorder %v336_v39, 3 }
 0x1ad   :  { %v342_v9 = vor.u32 %v341_v57, %v340_v17  ;;  %v345_v4 = vor.u32 %v344_v1, %v343_v52  ;;  %v348_v10 = vor.u32 %v347_v2, %v346_v53  ;;  %vm358_vm5 = vcmp.lt.s32.totalorder %v336_v39, 4 }
 0x1ae   :  { %v351_v12 = vor.u32 %v350_v16, %v349_v54  ;;  %v354_v15 = vor.u32 %v353_v41, %v352_v56  ;;  %v548_v37 = vshll.u32 %v1353_v43, %v545_v44  ;;  %v549_v60 = vshrl.u32 %v1354_v45, %v546_v11 }
 0x1af   :  { %v359_v13 = vsel %vm355_vm2, %v339_v8, %v342_v9  ;;  %v360_v35 = vsel %vm358_vm5, %v348_v10, 2102212464  ;;  %v363_v14 = vsel %vm355_vm2, %v342_v9, %v345_v4  ;;  %v367_v19 = vsel %vm355_vm2, %v345_v4, %v348_v10 }
 0x1b0   :  { %v361_v20 = vsel %vm357_vm4, %v345_v4, %v360_v35  ;;  %v364_v24 = vsel %vm358_vm5, %v351_v12, 920167782  ;;  %v368_v21 = vsel %vm358_vm5, %v354_v15, 1326507024  ;;  %v551_v42 = vshll.u32 %v1354_v45, %v545_v44 }
 0x1b1   :  { %v365_v28 = vsel %vm357_vm4, %v348_v10, %v364_v24  ;;  %v369_v32 = vsel %vm357_vm4, %v351_v12, %v368_v21  ;;  %v362_v25 = vsel %vm356_vm3, %v359_v13, %v361_v20  ;;  %v552_v52 = vshrl.u32 %v1355_v48, %v546_v11 }
 0x1b2   :  { %v366_v62 = vsel %vm356_vm3, %v363_v14, %v365_v28  ;;  %v370_v17 = vsel %vm356_vm3, %v367_v19, %v369_v32  ;;  %v550_v1 = vor.u32 %v549_v60, %v548_v37  ;;  %v554_v8 = vshll.u32 %v1355_v48, %v545_v44 }
 0x1b3   :  { %v1782_v53 = vmul.u32.u64.low %v1745_v27, %v370_v17  ;;  %v1783_v54 = vmul.u32.u64.high %v1745_v27, %v370_v17, %v1782_v53  ;;  %v1786_v56 = vmul.u32.u64.low %v1745_v27, %v366_v62  ;;  %v1787_v57 = vmul.u32.u64.high %v1745_v27, %v366_v62, %v1786_v56 }
 0x1b4   :  { %v553_v2 = vor.u32 %v552_v52, %v551_v42  ;;  %v555_v16 = vshrl.u32 %v1351_v36, %v546_v11  ;;  %v547_v39 = vshrl.u32 %v1353_v43, %v546_v11  ;;  %v557_v41 = vshll.u32 %v1351_v36, %v545_v44 }
 0x1b5   :  { %v558_v9 = vshrl.u32 %v1352_v38, %v546_v11  ;;  %v561_v4 = vshrl.u32 %v1356_v58, %v546_v11  ;;  %v378_v10 = vmul.u32 %v1745_v27, %v362_v25  ;;  %v560_v15 = vshll.u32 %v1352_v38, %v545_v44 }
 0x1b6   :  { %v556_v12 = vor.u32 %v555_v16, %v554_v8  ;;  %vm563_vm8 = vcmp.lt.s32.totalorder %v1756_v50, 1  ;;  %vm380_vm9 = vc.u32 %v1783_v54, %v1786_v56  ;;  %v381_v13 = vadd.s32 1, %v1787_v57 }
 0x1b7   :  { %v559_v35 = vor.u32 %v558_v9, %v557_v41  ;;  %vm564_vm10 = vcmp.lt.s32.totalorder %v1756_v50, 2  ;;  %v562_v14 = vor.u32 %v561_v4, %v560_v15  ;;  %vm565_vm11 = vcmp.lt.s32.totalorder %v1756_v50, 3 }
 0x1b8   :  { %vm566_vm12 = vcmp.lt.s32.totalorder %v1756_v50, 4  ;;  %v571_v11 = vsel %vm563_vm8, %v550_v1, %v553_v2  ;;  %v382_v27 = vsel %vm380_vm9, %v381_v13, %v1787_v57  ;;  %v575_v20 = vsel %vm563_vm8, %v553_v2, %v556_v12 }
 0x1b9   :  { %v568_v19 = vsel %vm566_vm12, %v556_v12, 2102212464  ;;  %v572_v44 = vsel %vm566_vm12, %v559_v35, 920167782  ;;  %v383_v24 = vadd.s32 %v382_v27, %v378_v10  ;;  %v567_v21 = vsel %vm563_vm8, %v547_v39, %v550_v1 }
 0x1ba   :  { %v573_v37 = vsel %vm565_vm11, %v556_v12, %v572_v44  ;;  %v576_v28 = vsel %vm566_vm12, %v562_v14, 1326507024  ;;  %v569_v32 = vsel %vm565_vm11, %v553_v2, %v568_v19  ;;  %v231_v25 = vsel %vm230_vm6, %v1753_v49, 0 }
 0x1bb   :  { %v574_v60 = vsel %vm564_vm10, %v571_v11, %v573_v37  ;;  %v577_v42 = vsel %vm565_vm11, %v559_v35, %v576_v28  ;;  %v384_v62 = vadd.s32 536870912, %v383_v24  ;;  %v1820_v57 = vmul.f32 0.6931472, %v1768_v7 }
 0x1bc   :  { %v578_v17 = vsel %vm564_vm10, %v575_v20, %v577_v42  ;;  %v1815_v52 = vmul.u32.u64.low %v1747_v46, %v574_v60  ;;  %v1816_v53 = vmul.u32.u64.high %v1747_v46, %v574_v60, %v1815_v52  ;;  %v1826_v8 = vmul.f32 0.6931472, %v1249_v18 }
 0x1bd   :  { %v1823_v1 = vmul.u32.u64.low %v1747_v46, %v578_v17  ;;  %v1824_v2 = vmul.u32.u64.high %v1747_v46, %v578_v17, %v1823_v1  ;;  %v1828_v16 = vshrl.u32 %v384_v62, 30  ;;  %v570_v49 = vsel %vm564_vm10, %v567_v21, %v569_v32 }
 0x1be   :  { %v233_v39 = vand.u32 31, %v231_v25  ;;  %v1836_v41 = vor.u32 %v1742_v33, %v928_v40  ;;  %v1841_v7 = vsel %vm739_vm7, nan, %v1738_v31  ;;  %v1844_v18 = vmul.f32 1.5707964, %v1715_v55 }
 0x1bf   :  { %v1848_v9 = vor.u32 4788187, %v933_v6  ;;  %v386_v50 = vshll.u32 %v1828_v16, 30  ;;  %v589_v4 = vadd.s32 1, %v1816_v53  ;;  %v1092_v40 = vsub.f32 0.0, %v1820_v57 }
 0x1c0   :  { %v234_v63 = vsub.s32 32, %v233_v39  ;;  %v586_v26 = vmul.u32 %v1747_v46, %v570_v49  ;;  %vm588_vm13 = vc.u32 %v1824_v2, %v1815_v52  ;;  %v1094_v55 = vsub.f32 0.0, %v1826_v8 }
 0x1c1   :  { %v1858_v31 = vsub.s32 %v383_v24, %v386_v50  ;;  %v590_v23 = vsel %vm588_vm13, %v589_v4, %v1816_v53  ;;  %v1063_v33 = vand.u32 2147483647, %v1841_v7  ;;  %v937_v6 = vcvt.s32.f32 %v1836_v41 }
 0x1c2   :  { %v591_v10 = vadd.s32 %v590_v23, %v586_v26  ;;  %v237_v47 = vshrl.u32 %v1354_v45, %v234_v63  ;;  %v430_v12 = vand.u32 2139095040, %v1844_v18  ;;  %v935_v46 = vand.u32 2147483647, %v1848_v9 }
 0x1c3   :  { %v389_v15 = vsub.s32 0, %v1858_v31  ;;  %v240_v13 = vshrl.u32 %v1355_v48, %v234_v63  ;;  %v243_v35 = vshrl.u32 %v1351_v36, %v234_v63  ;;  %v1869_v14 = vshll.u32 %v227_v5, 8 }
 0x1c4   :  { %v379_v11 = vadd.s32 %v1786_v56, %v1783_v54  ;;  %v592_v27 = vadd.s32 536870912, %v591_v10  ;;  %v1873_v19 = vshrl.u32 %v231_v25, 5  ;;  %v236_v44 = vshll.u32 %v1353_v43, %v233_v39 }
 0x1c5   :  { %v1126_v20 = vmin.u32 %v389_v15, %v1858_v31  ;;  %v239_v24 = vshll.u32 %v1354_v45, %v233_v39  ;;  %v242_v21 = vshll.u32 %v1355_v48, %v233_v39  ;;  %v246_v37 = vshrl.u32 %v1352_v38, %v234_v63 }
 0x1c6   :  { %v593_v28 = vshrl.u32 %v592_v27, 30  ;;  %v238_v32 = vor.u32 %v237_v47, %v236_v44  ;;  %v245_v60 = vshll.u32 %v1351_v36, %v233_v39  ;;  %v249_v42 = vshrl.u32 %v1356_v58, %v234_v63 }
 0x1c7   :  { %v391_v54 = vclz %v1126_v20  ;;  %v241_v56 = vor.u32 %v240_v13, %v239_v24  ;;  %v244_v25 = vor.u32 %v243_v35, %v242_v21  ;;  %v248_v62 = vshll.u32 %v1352_v38, %v233_v39 }
 0x1c8   :  { %v594_v17 = vshll.u32 %v593_v28, 30  ;;  %v247_v53 = vor.u32 %v246_v37, %v245_v60  ;;  %vm251_vm15 = vcmp.lt.s32.totalorder %v1873_v19, 1  ;;  %v431_v1 = vshrl.u32 %v430_v12, 23 }
 0x1c9   :  { %v1127_v49 = vadd.s32 4294967294, %v391_v54  ;;  %v250_v50 = vor.u32 %v249_v42, %v248_v62  ;;  %vm252_vm0 = vcmp.lt.s32.totalorder %v1873_v19, 2  ;;  %vm254_vm1 = vcmp.lt.s32.totalorder %v1873_v19, 4 }
 0x1ca   :  { %v409_v4 = vsub.s32 4, %v1828_v16  ;;  %vm533_vm2 = vcmp.lt.s32.totalorder %v1713_v51, 0  ;;  %v1889_v5 = vsub.s32 %v591_v10, %v594_v17  ;;  %vm253_vm3 = vcmp.lt.s32.totalorder %v1873_v19, 3 }
 0x1cb   :  { %v260_v39 = vsel %vm254_vm1, %v247_v53, 920167782  ;;  %vm1896_vm4 = vcmp.le.f32.partialorder %v323_v0, 0.7853982  ;;  %vm1128_vm5 = vcmp.lt.s32.totalorder %v1127_v49, 0  ;;  %v235_v23 = vshrl.u32 %v1353_v43, %v234_v63 }
 0x1cc   :  { %v259_v47 = vsel %vm251_vm15, %v238_v32, %v241_v56  ;;  %v261_v10 = vsel %vm253_vm3, %v244_v25, %v260_v39  ;;  %v394_v12 = vsel %vm1128_vm5, 0, %v1127_v49  ;;  %v597_v15 = vsub.s32 0, %v1889_v5 }
 0x1cd   :  { %v617_v13 = vsub.s32 4, %v593_v28  ;;  %v263_v35 = vsel %vm251_vm15, %v241_v56, %v244_v25  ;;  %v395_v0 = vsub.s32 32, %v394_v12  ;;  %v399_v27 = vsub.s32 4294967266, %v394_v12 }
 0x1ce   :  { %v256_v44 = vsel %vm254_vm1, %v244_v25, 2102212464  ;;  %v264_v63 = vsel %vm254_vm1, %v250_v50, 1326507024  ;;  %v396_v20 = vshll.u32 %v1858_v31, %v394_v12  ;;  %v1134_v24 = vmin.u32 %v597_v15, %v1889_v5 }
 0x1cf   :  { %v262_v21 = vsel %vm252_vm0, %v259_v47, %v261_v10  ;;  %v265_v37 = vsel %vm253_vm3, %v247_v53, %v264_v63  ;;  %v397_v60 = vshrl.u32 %v379_v11, %v395_v0  ;;  %v400_v42 = vadd.s32 127, %v399_v27 }
 0x1d0   :  { %v266_v54 = vsel %vm252_vm0, %v263_v35, %v265_v37  ;;  %v1129_v62 = vadd.s32 4294967169, %v431_v1  ;;  %v410_v25 = vsel %vm325_vm14, %v409_v4, %v1828_v16  ;;  %v599_v17 = vclz %v1134_v24 }
 0x1d1   :  { %v255_v31 = vsel %vm251_vm15, %v235_v23, %v238_v32  ;;  %v257_v49 = vsel %vm253_vm3, %v241_v56, %v256_v44  ;;  %v398_v50 = vor.u32 %v397_v60, %v396_v20  ;;  %v401_v39 = vshll.u32 %v400_v42, 23 }
 0x1d2   :  { %v1928_v11 = vmul.u32.u64.low %v1869_v14, %v266_v54  ;;  %v1929_v53 = vmul.u32.u64.high %v1869_v14, %v266_v54, %v1928_v11  ;;  %vm1933_vm6 = vcmp.le.f32.partialorder %v531_v3, 0.7853982  ;;  %v1135_v16 = vadd.s32 4294967294, %v599_v17 }
 0x1d3   :  { %v1938_v4 = vmul.u32.u64.low %v1869_v14, %v262_v21  ;;  %v1939_v47 = vmul.u32.u64.high %v1869_v14, %v262_v21, %v1938_v4  ;;  %v402_v32 = vor.u32 4788187, %v401_v39  ;;  %v618_v56 = vsel %vm533_vm2, %v617_v13, %v593_v28 }
 0x1d4   :  { %v427_v23 = vand.u32 2147483647, %v1844_v18  ;;  %v437_v10 = vadd.s32 1, %v1129_v62  ;;  %v412_v12 = vsel %vm1896_vm4, 0, %v410_v25  ;;  %v587_v3 = vadd.s32 %v1815_v52, %v1824_v2 }
 0x1d5   :  { %vm1136_vm7 = vcmp.lt.s32.totalorder %v1135_v16, 0  ;;  %v258_v15 = vsel %vm252_vm0, %v255_v31, %v257_v49  ;;  %v403_v35 = vand.u32 2147483647, %v402_v32  ;;  %v405_v0 = vcvt.s32.f32 %v398_v50 }
 0x1d6   :  { %v602_v27 = vsel %vm1136_vm7, 0, %v1135_v16  ;;  %vm276_vm8 = vc.u32 %v1929_v53, %v1938_v4  ;;  %v620_v44 = vsel %vm1933_vm6, 0, %v618_v56  ;;  %v277_v63 = vadd.s32 1, %v1939_v47 }
 0x1d7   :  { %v603_v28 = vsub.s32 32, %v602_v27  ;;  %v607_v13 = vsub.s32 4294967266, %v602_v27  ;;  %v406_v20 = vmul.f32 %v405_v0, %v403_v35  ;;  %v604_v52 = vshll.u32 %v1889_v5, %v602_v27 }
 0x1d8   :  { %v274_v2 = vmul.u32 %v1869_v14, %v258_v15  ;;  %vm438_vm9 = vcmp.gt.s32.totalorder %v437_v10, 0  ;;  %v278_v21 = vsel %vm276_vm8, %v277_v63, %v1939_v47  ;;  %vm857_vm10 = vcmp.lt.s32.totalorder %v1583_v29, 0 }
 0x1d9   :  { %v605_v19 = vshrl.u32 %v587_v3, %v603_v28  ;;  %v608_v24 = vadd.s32 127, %v607_v13  ;;  %v439_v37 = vsel %vm438_vm9, %v437_v10, 0  ;;  %v407_v60 = vxor.u32 2147483648, %v406_v20 }
 0x1da   :  { %v416_v42 = vadd.s32 3, %v412_v12  ;;  %v279_v54 = vadd.s32 %v278_v21, %v274_v2  ;;  %v441_v62 = vand.u32 31, %v439_v37  ;;  %v434_v31 = vand.u32 8388607, %v427_v23 }
 0x1db   :  { %v606_v25 = vor.u32 %v605_v19, %v604_v52  ;;  %v609_v17 = vshll.u32 %v608_v24, 23  ;;  %v938_v14 = vmul.f32 %v937_v6, %v935_v46  ;;  %v408_v5 = vsel %vm325_vm14, %v407_v60, %v406_v20 }
 0x1dc   :  { %v624_v49 = vadd.s32 3, %v620_v44  ;;  %v280_v50 = vadd.s32 536870912, %v279_v54  ;;  %v442_v39 = vsub.s32 32, %v441_v62  ;;  %v411_v11 = vsel %vm1896_vm4, %v1711_v34, %v408_v5 }
 0x1dd   :  { %v610_v16 = vor.u32 4788187, %v609_v17  ;;  %vm1973_vm11 = vcmp.le.f32.partialorder %v855_v22, 0.7853982  ;;  %v941_v41 = vsub.s32 4, %v1682_v61  ;;  %1250 = vcosq.f32 %v411_v11 }
 0x1de   :  { %v1978_v9 = vand.u32 3, %v416_v42  ;;  %v1980_v6 = vshrl.u32 %v280_v50, 30  ;;  %v1984_v46 = vsub.f32 1.0, %v1063_v33  ;;  %1252 = vsinq.f32 %v411_v11  ;;  %v1067_v11 = vld [vmem:[#allocation6] sm:$0xff] }
 0x1df   :  { %v611_v26 = vand.u32 2147483647, %v610_v16  ;;  %v613_v32 = vcvt.s32.f32 %v606_v25  ;;  %v939_v56 = vxor.u32 2147483648, %v938_v14  ;;  %v1986_v10 = vand.u32 3, %v624_v49 }
 0x1e0   :  { %v282_v22 = vshll.u32 %v1980_v6, 30  ;;  %v435_v12 = vor.u32 8388608, %v434_v31  ;;  %v445_v3 = vshrl.u32 %v1354_v45, %v442_v39  ;;  %v448_v35 = vshrl.u32 %v1355_v48, %v442_v39 }
 0x1e1   :  { %v614_v15 = vmul.f32 %v613_v32, %v611_v26  ;;  %v453_v0 = vshll.u32 %v1351_v36, %v441_v62  ;;  %v454_v27 = vshrl.u32 %v1352_v38, %v442_v39  ;;  %vm422_vm12 = vcmp.eq.s32.totalorder %v1978_v9, 2 }
 0x1e2   :  { %v1994_v28 = vsub.s32 %v279_v54, %v282_v22  ;;  %v1996_v13 = vshrl.u32 %v439_v37, 5  ;;  %v444_v44 = vshll.u32 %v1353_v43, %v441_v62  ;;  %v451_v63 = vshrl.u32 %v1351_v36, %v442_v39 }
 0x1e3   :  { %vm419_vm13 = vcmp.eq.s32.totalorder %v1978_v9, 0  ;;  %v615_v20 = vxor.u32 2147483648, %v614_v15  ;;  %v447_v52 = vshll.u32 %v1354_v45, %v441_v62  ;;  %v455_v2 = vor.u32 %v454_v27, %v453_v0 }
 0x1e4   :  { %v457_v19 = vshrl.u32 %v1356_v58, %v442_v39  ;;  %vm418_vm14 = vcmp.lt.s32.totalorder %v1978_v9, 2  ;;  %v285_v24 = vsub.s32 0, %v1994_v28  ;;  %v450_v21 = vshll.u32 %v1355_v48, %v441_v62 }
 0x1e5   :  { %v2006_v37 = vshll.u32 %v435_v12, 8  ;;  %v940_v60 = vsel %vm857_vm10, %v939_v56, %v938_v14  ;;  %vm415_vm15 = vweird.f32 %v1711_v34  ;;  %v616_v36 = vsel %vm533_vm2, %v615_v20, %v614_v15 }
 0x1e6   :  { %v446_v45 = vor.u32 %v445_v3, %v444_v44  ;;  %v449_v42 = vor.u32 %v448_v35, %v447_v52  ;;  %v456_v58 = vshll.u32 %v1352_v38, %v441_v62  ;;  %v619_v54 = vsel %vm1933_vm6, %v1713_v51, %v616_v36 }
 0x1e7   :  { %v1122_v48 = vmin.u32 %v285_v24, %v1994_v28  ;;  %v452_v25 = vor.u32 %v451_v63, %v450_v21  ;;  %vm462_vm0 = vcmp.lt.s32.totalorder %v1996_v13, 4  ;;  %1254 = vcosq.f32 %v619_v54  ;;  %v1251_v5 = vpop.eup %1250 }
 0x1e8   :  { %v275_v17 = vadd.s32 %v1938_v4, %v1929_v53  ;;  %v458_v31 = vor.u32 %v457_v19, %v456_v58  ;;  %v468_v14 = vsel %vm462_vm0, %v455_v2, 920167782  ;;  %1256 = vsinq.f32 %v619_v54  ;;  %v1253_v49 = vpop.eup %1252 }
 0x1e9   :  { %v287_v38 = vclz %v1122_v48  ;;  %v443_v62 = vshrl.u32 %v1353_v43, %v442_v39  ;;  %v943_v1 = vsel %vm1973_vm11, %v1583_v29, %v940_v60  ;;  %v423_v50 = vxor.u32 2147483648, %v1251_v5 }
 0x1ea   :  { %vm459_vm1 = vcmp.lt.s32.totalorder %v1996_v13, 1  ;;  %vm460_vm2 = vcmp.lt.s32.totalorder %v1996_v13, 2  ;;  %vm461_vm3 = vcmp.lt.s32.totalorder %v1996_v13, 3  ;;  %v420_v53 = vxor.u32 2147483648, %v1253_v49 }
 0x1eb   :  { %v1123_v4 = vadd.s32 4294967294, %v287_v38  ;;  %v467_v16 = vsel %vm459_vm1, %v446_v45, %v449_v42  ;;  %v469_v26 = vsel %vm461_vm3, %v452_v25, %v468_v14  ;;  %v424_v43 = vsel %vm422_vm12, %v423_v50, %v1253_v49 }
 0x1ec   :  { %v464_v39 = vsel %vm462_vm0, %v452_v25, 2102212464  ;;  %v471_v32 = vsel %vm459_vm1, %v449_v42, %v452_v25  ;;  %v472_v56 = vsel %vm462_vm0, %v458_v31, 1326507024  ;;  %v421_v22 = vsel %vm419_vm13, %v1251_v5, %v420_v53 }
 0x1ed   :  { %vm1124_vm4 = vcmp.lt.s32.totalorder %v1123_v4, 0  ;;  %v463_v12 = vsel %vm459_vm1, %v443_v62, %v446_v45  ;;  %v473_v3 = vsel %vm461_vm3, %v455_v2, %v472_v56  ;;  %v425_v15 = vsel %vm418_vm14, %v421_v22, %v424_v43 }
 0x1ee   :  { %v290_v35 = vsel %vm1124_vm4, 0, %v1123_v4  ;;  %vm1071_vm5 = vcmp.gt.f32.partialorder %v1067_v11, 0.5  ;;  %v470_v0 = vsel %vm460_vm2, %v467_v16, %v469_v26  ;;  %v474_v27 = vsel %vm460_vm2, %v471_v32, %v473_v3 }
 0x1ef   :  { %v426_v44 = vsel %vm415_vm15, nan, %v425_v15  ;;  %v291_v63 = vsub.s32 32, %v290_v35  ;;  %v295_v20 = vsub.s32 4294967266, %v290_v35  ;;  %v465_v52 = vsel %vm461_vm3, %v449_v42, %v464_v39 }
 0x1f0   :  { %v636_v2 = vand.u32 2147483647, %v426_v44  ;;  %v292_v9 = vshll.u32 %v1994_v28, %v290_v35  ;;  %v2054_v19 = vmul.u32.u64.low %v2006_v37, %v474_v27  ;;  %v2055_v24 = vmul.u32.u64.high %v2006_v37, %v474_v27, %v2054_v19 }
 0x1f1   :  { %v293_v21 = vshrl.u32 %v275_v17, %v291_v63  ;;  %v296_v60 = vadd.s32 127, %v295_v20  ;;  %v2058_v36 = vmul.u32.u64.low %v2006_v37, %v470_v0  ;;  %v2059_v45 = vmul.u32.u64.high %v2006_v37, %v470_v0, %v2058_v36  ;;  %v1255_v34 = vpop.eup %1254 }
 0x1f2   :  { %v1096_v58 = vadd.f32 %v1092_v40, %v636_v2  ;;  %vm627_vm6 = vcmp.eq.s32.totalorder %v1986_v10, 0  ;;  %vm630_vm7 = vcmp.eq.s32.totalorder %v1986_v10, 2  ;;  %v942_v28 = vsel %vm857_vm10, %v941_v41, %v1682_v61  ;;  %v1257_v42 = vpop.eup %1256 }
 0x1f3   :  { %v631_v54 = vxor.u32 2147483648, %v1255_v34  ;;  %v294_v48 = vor.u32 %v293_v21, %v292_v9  ;;  %v297_v25 = vshll.u32 %v296_v60, 23  ;;  %v466_v17 = vsel %vm460_vm2, %v463_v12, %v465_v52 }
 0x1f4   :  { %v628_v31 = vxor.u32 2147483648, %v1257_v42  ;;  %vm484_vm8 = vc.u32 %v2055_v24, %v2058_v36  ;;  %1258 = vcosq.f32 %v943_v1  ;;  %v485_v14 = vadd.s32 1, %v2059_v45  ;;  %1108 = vst [vmem:[%s2130_s5 + $0x8] sm:$0xff] %v1096_v58 }
 0x1f5   :  { %v632_v57 = vsel %vm630_vm7, %v631_v54, %v1257_v42  ;;  %v298_v40 = vor.u32 4788187, %v297_v25  ;;  %1260 = vsinq.f32 %v943_v1  ;;  %vm623_vm9 = vweird.f32 %v1713_v51 }
 0x1f6   :  { %vm626_vm10 = vcmp.lt.s32.totalorder %v1986_v10, 2  ;;  %v629_v61 = vsel %vm627_vm6, %v1255_v34, %v628_v31  ;;  %v482_v41 = vmul.u32 %v2006_v37, %v466_v17  ;;  %v301_v38 = vcvt.s32.f32 %v294_v48  ;;  %v1102_v37 = vld [vmem:[%s2130_s5 + $0x18] sm:$0x3f] }
 0x1f7   :  { %v633_v13 = vsel %vm626_vm10, %v629_v61, %v632_v57  ;;  %v299_v5 = vand.u32 2147483647, %v298_v40  ;;  %v486_v62 = vsel %vm484_vm8, %v485_v14, %v2059_v45  ;;  %v305_v1 = vsub.s32 4, %v1980_v6 }
 0x1f8   :  { %v634_v49 = vsel %vm623_vm9, nan, %v633_v13  ;;  %v487_v50 = vadd.s32 %v486_v62, %v482_v41  ;;  %v944_v53 = vsel %vm1973_vm11, 0, %v942_v28  ;;  %v1079_v10 = vsel %vm1071_vm5, %v1063_v33, %v1984_v46 }
 0x1f9   :  { %v638_v51 = vand.u32 2147483647, %v634_v49  ;;  %v302_v4 = vmul.f32 %v301_v38, %v299_v5  ;;  %vm221_vm12 = vcmp.lt.s32.totalorder %v1717_v59, 0  ;;  %v948_v47 = vadd.s32 3, %v944_v53 }
 0x1fa   :  { %v488_v16 = vadd.s32 536870912, %v487_v50  ;;  %v306_v39 = vsel %vm221_vm12, %v305_v1, %v1980_v6  ;;  %1262 = vlog2.f32 %v1079_v10  ;;  %vm220_vm11 = vcmp.le.f32.partialorder %v219_v30, 0.7853982 }
 0x1fb   :  { %v1098_v26 = vadd.f32 %v1094_v55, %v638_v51  ;;  %v303_v43 = vxor.u32 2147483648, %v302_v4  ;;  %v308_v56 = vsel %vm220_vm11, 0, %v306_v39  ;;  %v949_v6 = vand.u32 3, %v948_v47 }
 0x1fc   :  { %v2099_v32 = vshrl.u32 %v488_v16, 30  ;;  %v312_v12 = vadd.s32 3, %v308_v56  ;;  %vm947_vm0 = vweird.f32 %v1583_v29  ;;  %v483_v34 = vadd.s32 %v2058_v36, %v2055_v24  ;;  %v1069_v24 = vld [vmem:[#allocation6 + $0x10] sm:$0xff] }
 0x1fd   :  { %v1106_v7 = vadd.f32 %v1102_v37, %v1098_v26  ;;  %v304_v33 = vsel %vm221_vm12, %v303_v43, %v302_v4  ;;  %vm951_vm13 = vcmp.eq.s32.totalorder %v949_v6, 0  ;;  %vm954_vm14 = vcmp.eq.s32.totalorder %v949_v6, 2 }
 0x1fe   :  { %v1259_v46 = vpop.eup %1258  ;;  %v307_v11 = vsel %vm220_vm11, %v1717_v59, %v304_v33  ;;  %v490_v8 = vshll.u32 %v2099_v32, 30  ;;  %vm950_vm15 = vcmp.lt.s32.totalorder %v949_v6, 2  ;;  %v313_v27 = vand.u32 3, %v312_v12 }
 0x1ff   :  { %v1261_v55 = vpop.eup %1260  ;;  %1110 = vst [vmem:[%s2130_s5 + $0x18] sm:$0x3f] %v1106_v7  ;;  %1264 = vcosq.f32 %v307_v11  ;;  %v955_v30 = vxor.u32 2147483648, %v1259_v46  ;;  %vm311_vm4 = vweird.f32 %v1717_v59  ;;  %vm1073_vm6 = vcmp.gt.f32.partialorder %v1069_v24, 0.5 }
 0x200   :  { %1266 = vsinq.f32 %v307_v11  ;;  %v491_v22 = vsub.s32 %v487_v50, %v490_v8  ;;  %v952_v15 = vxor.u32 2147483648, %v1261_v55  ;;  %vm315_vm1 = vcmp.eq.s32.totalorder %v313_v27, 0 }
 0x201   :  { %v956_v20 = vsel %vm954_vm14, %v955_v30, %v1261_v55  ;;  %vm318_vm3 = vcmp.eq.s32.totalorder %v313_v27, 2  ;;  %vm314_vm5 = vcmp.lt.s32.totalorder %v313_v27, 2  ;;  %v513_v50 = vsub.s32 4, %v2099_v32 }
 0x202   :  { %v493_v3 = vsub.s32 0, %v491_v22  ;;  %v953_v63 = vsel %vm951_vm13, %v1259_v46, %v952_v15  ;;  %vm429_vm7 = vcmp.lt.s32.totalorder %v1844_v18, 0  ;;  %vm428_vm8 = vcmp.le.f32.partialorder %v427_v23, 0.7853982 }
 0x203   :  { %v957_v19 = vsel %vm950_vm15, %v953_v63, %v956_v20  ;;  %v514_v10 = vsel %vm429_vm7, %v513_v50, %v2099_v32  ;;  %vm519_vm11 = vweird.f32 %v1844_v18 }
 0x204   :  { %v1130_v35 = vmin.u32 %v493_v3, %v491_v22  ;;  %v1263_v0 = vpop.eup %1262  ;;  %v958_v48 = vsel %vm947_vm0, nan, %v957_v19  ;;  %v516_v16 = vsel %vm428_vm8, 0, %v514_v10 }
 0x205   :  { %v1084_v9 = vmul.f32 0.6931472, %v1263_v0  ;;  %v1065_v61 = vand.u32 2147483647, %v958_v48  ;;  %v520_v26 = vadd.s32 3, %v516_v16 }
 0x206   :  { %v495_v44 = vclz %v1130_v35 }
 0x207   :  { %v1091_v29 = vsub.f32 0.0, %v1084_v9  ;;  %v1077_v62 = vsub.f32 1.0, %v1065_v61  ;;  %v521_v47 = vand.u32 3, %v520_v26 }
 0x208   :  { %v1131_v52 = vadd.s32 4294967294, %v495_v44 }
 0x209   :  { %v1265_v2 = vpop.eup %1264  ;;  %v1081_v53 = vsel %vm1073_vm6, %v1065_v61, %v1077_v62  ;;  %vm526_vm9 = vcmp.eq.s32.totalorder %v521_v47, 2  ;;  %vm523_vm10 = vcmp.eq.s32.totalorder %v521_v47, 0  ;;  %vm522_vm12 = vcmp.lt.s32.totalorder %v521_v47, 2 }
 0x20a   :  { %v1267_v21 = vpop.eup %1266  ;;  %v319_v60 = vxor.u32 2147483648, %v1265_v2  ;;  %vm1132_vm2 = vcmp.lt.s32.totalorder %v1131_v52, 0  ;;  %1268 = vlog2.f32 %v1081_v53 }
 0x20b   :  { %v316_v45 = vxor.u32 2147483648, %v1267_v21  ;;  %v498_v58 = vsel %vm1132_vm2, 0, %v1131_v52 }
 0x20c   :  { %v320_v28 = vsel %vm318_vm3, %v319_v60, %v1267_v21  ;;  %v499_v42 = vsub.s32 32, %v498_v58  ;;  %v503_v54 = vsub.s32 4294967266, %v498_v58  ;;  %v500_v31 = vshll.u32 %v491_v22, %v498_v58 }
 0x20d   :  { %v317_v25 = vsel %vm315_vm1, %v1265_v2, %v316_v45 }
 0x20e   :  { %v321_v17 = vsel %vm314_vm5, %v317_v25, %v320_v28  ;;  %v501_v57 = vshrl.u32 %v483_v34, %v499_v42  ;;  %v504_v40 = vadd.s32 127, %v503_v54 }
 0x20f   :  { %v322_v14 = vsel %vm311_vm4, nan, %v321_v17 }
 0x210   :  { %v635_v41 = vand.u32 2147483647, %v322_v14  ;;  %v502_v13 = vor.u32 %v501_v57, %v500_v31  ;;  %v505_v5 = vshll.u32 %v504_v40, 23 }
 0x212   :  { %v1095_v36 = vadd.f32 %v1091_v29, %v635_v41  ;;  %v506_v38 = vor.u32 4788187, %v505_v5  ;;  %v509_v1 = vcvt.s32.f32 %v502_v13 }
 0x214   :  { %v507_v49 = vand.u32 2147483647, %v506_v38  ;;  %1107 = vst [vmem:[%s2130_s5] sm:$0xff] %v1095_v36  ;;  %v1269_v43 = vpop.eup %1268 }
 0x215   :  { %v1088_v46 = vmul.f32 0.6931472, %v1269_v43 }
 0x216   :  { %v510_v59 = vmul.f32 %v509_v1, %v507_v49 }
 0x217   :  { %v1093_v55 = vsub.f32 0.0, %v1088_v46 }
 0x218   :  { %v511_v51 = vxor.u32 2147483648, %v510_v59 }
 0x21a   :  { %v512_v4 = vsel %vm429_vm7, %v511_v51, %v510_v59 }
 0x21b   :  { %v515_v37 = vsel %vm428_vm8, %v1844_v18, %v512_v4 }
 0x21c   :  { %1270 = vcosq.f32 %v515_v37 }
 0x21d   :  { %1272 = vsinq.f32 %v515_v37 }
 0x226   :  { %v1271_v39 = vpop.eup %1270 }
 0x227   :  { %v1273_v7 = vpop.eup %1272  ;;  %v527_v33 = vxor.u32 2147483648, %v1271_v39 }
 0x228   :  { %v524_v11 = vxor.u32 2147483648, %v1273_v7 }
 0x229   :  { %v528_v23 = vsel %vm526_vm9, %v527_v33, %v1273_v7 }
 0x22a   :  { %v525_v8 = vsel %vm523_vm10, %v1271_v39, %v524_v11 }
 0x22b   :  { %v529_v32 = vsel %vm522_vm12, %v525_v8, %v528_v23 }
 0x22c   :  { %v530_v56 = vsel %vm519_vm11, nan, %v529_v32 }
 0x22d   :  { %v637_v6 = vand.u32 2147483647, %v530_v56 }
 0x22f   :  { %v1097_v22 = vadd.f32 %v1093_v55, %v637_v6 }
 0x231   :  { %1109 = vst [vmem:[%s2130_s5 + $0x10] sm:$0xff] %v1097_v22 }
 0x232   :  { %1115 = vsyncpa [#allocation3], 1 }
 0x233   :  { %1116 = vsyncpa [#allocation5], 1 }

</bundles_post_ra>
